<compile_context>
chip_gen: v7x
topology: tpu7x:2x2x1
jax: 0.10.0
libtpu: 0.0.40
codegen_flags: <defaults>
</compile_context>

<pallas_src>
import functools

import jax
import jax.numpy as jnp
from jax.experimental import pallas as pl
from jax.experimental.pallas import tpu as pltpu

LN_EPS = 1e-5


def _layernorm(x, gamma, beta):
    mu = jnp.mean(x, axis=-1, keepdims=True)
    xc = x - mu
    var = jnp.mean(xc * xc, axis=-1, keepdims=True)
    return xc * jax.lax.rsqrt(var + LN_EPS) * gamma + beta


def _gelu_exact(x):
    # Exact (erf-based) GELU matching PyTorch nn.GELU() default.  erf uses the
    # Abramowitz & Stegun 7.1.26 polynomial (|err| < 1.5e-7): only exp/mul/add/select,
    # all of which lower cleanly in Mosaic.
    z = x * 0.7071067811865476
    sgn = jnp.where(z >= 0.0, 1.0, -1.0)
    a = jnp.abs(z)
    t = 1.0 / (1.0 + 0.3275911 * a)
    poly = t * (0.254829592
                + t * (-0.284496736
                       + t * (1.421413741
                              + t * (-1.453152027 + t * 1.061405429))))
    erf = sgn * (1.0 - poly * jnp.exp(-a * a))
    return 0.5 * x * (1.0 + erf)


def _pick_tile(total, target, unit=8):
    """Largest multiple-of-`unit` tile <= target dividing `total`; falls back to the
    full extent (always a legal BlockSpec block)."""
    t = (min(total, max(unit, target)) // unit) * unit
    while t >= unit:
        if total % t == 0:
            return t
        t -= unit
    return total


# ---- kernel 1: LayerNorm1 + Q/K/V projections over a (tokens, C) slab -----------------
def _ln_qkv_kernel(x_ref, g_ref, b_ref, wq_ref, wk_ref, wv_ref, q_ref, k_ref, v_ref):
    # LayerNorm in f32, dots in the compute dtype (bf16 in the production path) with
    # f32 accumulation on the MXU.
    xn = _layernorm(x_ref[...], g_ref[...], b_ref[...]).astype(wq_ref.dtype)
    q_ref[...] = jnp.dot(xn, wq_ref[...], preferred_element_type=jnp.float32).astype(q_ref.dtype)
    k_ref[...] = jnp.dot(xn, wk_ref[...], preferred_element_type=jnp.float32).astype(k_ref.dtype)
    v_ref[...] = jnp.dot(xn, wv_ref[...], preferred_element_type=jnp.float32).astype(v_ref.dtype)


# ---- kernel 2: attention, one batch element per grid step -----------------------------
def _attention_kernel(q_ref, k_ref, v_ref, *out_refs, H, approx_recip):
    # q/k/v blocks are the full (N, C) strips of one sequence; heads are static VMEM
    # lane slices (no HBM transpose anywhere).  Output o is written merged token-major
    # (N, C) in a single lane-dense store; the optional attn map is written per head.
    o_ref = out_refs[-1]
    attn_ref = out_refs[0] if len(out_refs) == 2 else None
    N, C = q_ref.shape
    D = C // H
    q = q_ref[...]
    k = k_ref[...]
    v = v_ref[...]
    o_heads = []
    for h in range(H):               # static unroll; softmax scale already folded in Wq
        lo, hi = h * D, (h + 1) * D
        s = jnp.einsum("nd,md->nm", q[:, lo:hi], k[:, lo:hi],
                       preferred_element_type=jnp.float32)
        s = s - jnp.max(s, axis=-1, keepdims=True)
        e = jnp.exp(s)
        # One reciprocal per row + broadcast multiply; EUP approximation on the bf16
        # path (error far below bf16 rounding), exact divide on the f32 path.
        p = e * pl.reciprocal(jnp.sum(e, axis=-1, keepdims=True), approx=approx_recip)
        if attn_ref is not None:
            attn_ref[h] = p.astype(attn_ref.dtype)
        o_heads.append(jnp.dot(p.astype(v.dtype), v[:, lo:hi],
                               preferred_element_type=jnp.float32))
    o_ref[...] = jnp.concatenate(o_heads, axis=-1).astype(o_ref.dtype)


# ---- kernel 3: out-proj + residual + LayerNorm2 + MLP (hidden dim tiled) + residual ----
def _proj_mlp_kernel(x_ref, o_ref, wp_ref, bp_ref, n2w_ref, n2b_ref,
                     w1_ref, b1_ref, w2_ref, b2_ref, y_ref,
                     x1_sc, xn_sc, acc_sc):
    j = pl.program_id(1)             # reduction axis over the MLP hidden dim

    @pl.when(j == 0)
    def _init():
        x1 = (x_ref[...]
              + jnp.dot(o_ref[...], wp_ref[...], preferred_element_type=jnp.float32)
              + bp_ref[...])
        x1_sc[...] = x1
        xn_sc[...] = _layernorm(x1, n2w_ref[...], n2b_ref[...]).astype(xn_sc.dtype)
        acc_sc[...] = jnp.zeros_like(acc_sc)

    h = jnp.dot(xn_sc[...], w1_ref[...], preferred_element_type=jnp.float32) + b1_ref[...]
    h = _gelu_exact(h)
    acc_sc[...] += jnp.dot(h.astype(w2_ref.dtype), w2_ref[...],
                           preferred_element_type=jnp.float32)

    @pl.when(j == pl.num_programs(1) - 1)
    def _finalize():
        y_ref[...] = (x1_sc[...] + acc_sc[...] + b2_ref[...]).astype(y_ref.dtype)


@functools.partial(jax.jit, static_argnames=("num_heads", "compute_dtype", "return_attn"))
def transformer_encoder_layer(x, params, num_heads,
                              compute_dtype=jnp.bfloat16, return_attn=True):
    """x: (B, N, C) f32; params: PyTorch-layout weights. Returns (out, attn_or_None)."""
    B, N, C = x.shape
    H = num_heads
    D = C // H
    Hd = params["w1"].shape[0]                 # MLP hidden dim (= mlp_ratio * C)
    BN = B * N
    scale = D ** (-0.5)
    f32 = jnp.float32
    cdt = jnp.dtype(compute_dtype)
    approx_recip = (cdt == jnp.dtype(jnp.bfloat16))

    x2d = x.reshape(BN, C).astype(f32)         # free metadata reshape

    # PyTorch nn.Linear stores (out, in); transpose for x @ W.  Fold the softmax scale
    # into the Q weight (valid: qkv_bias=False).  Weights cast to the compute dtype.
    wqkv = jnp.asarray(params["wqkv"], f32)                    # (3C, C)
    wq_t = (wqkv[:C] * scale).T.astype(cdt)                    # (C, C)
    wk_t = wqkv[C:2 * C].T.astype(cdt)
    wv_t = wqkv[2 * C:].T.astype(cdt)
    wproj_t = jnp.asarray(params["wproj"], f32).T.astype(cdt)  # (C, C)
    w1_t = jnp.asarray(params["w1"], f32).T.astype(cdt)        # (C, Hd)
    w2_t = jnp.asarray(params["w2"], f32).T.astype(cdt)        # (Hd, C)
    row = lambda v: jnp.asarray(v, f32).reshape(1, -1)
    n1w, n1b = row(params["n1w"]), row(params["n1b"])
    n2w, n2b = row(params["n2w"]), row(params["n2b"])
    bproj, b1, b2 = row(params["bproj"]), row(params["b1"]), row(params["b2"])

    # Token tile: multiple of 8, and capped so the token grid has >= 2 steps (megacore).
    tm = _pick_tile(BN, min(512, max(8, BN // 2)), unit=8)
    # MLP hidden tile: multiple of 128 (lane tiling), >= 2 steps when Hd permits, so the
    # w1/w2 tiles stream instead of sitting fully resident (v7x 64 MiB VMEM budget).
    hd_t = _pick_tile(Hd, min(512, max(128, Hd // 2)), unit=128)

    parallel1 = pltpu.CompilerParams(dimension_semantics=("parallel",))

    # -------- kernel 1: LN1 + Q/K/V projections, (BN, C) @ (C, C) x3 --------
    q2d, k2d, v2d = pl.pallas_call(
        _ln_qkv_kernel,
        out_shape=tuple(jax.ShapeDtypeStruct((BN, C), cdt) for _ in range(3)),
        grid=(BN // tm,),
        in_specs=[
            pl.BlockSpec((tm, C), lambda i: (i, 0)),   # x
            pl.BlockSpec((1, C), lambda i: (0, 0)),    # norm1 gamma
            pl.BlockSpec((1, C), lambda i: (0, 0)),    # norm1 beta
            pl.BlockSpec((C, C), lambda i: (0, 0)),    # Wq (scale folded)
            pl.BlockSpec((C, C), lambda i: (0, 0)),    # Wk
            pl.BlockSpec((C, C), lambda i: (0, 0)),    # Wv
        ],
        out_specs=tuple(pl.BlockSpec((tm, C), lambda i: (i, 0)) for _ in range(3)),
        compiler_params=parallel1,
    )(x2d, n1w, n1b, wq_t, wk_t, wv_t)

    # -------- kernel 2: attention, grid over batch elements --------
    attn_kernel = functools.partial(_attention_kernel, H=H, approx_recip=approx_recip)
    seq_spec = pl.BlockSpec((N, C), lambda b: (b, 0))
    if return_attn:
        out_shape2 = (jax.ShapeDtypeStruct((B, H, N, N), cdt),
                      jax.ShapeDtypeStruct((BN, C), cdt))
        out_specs2 = (pl.BlockSpec((None, H, N, N), lambda b: (b, 0, 0, 0)),
                      pl.BlockSpec((N, C), lambda b: (b, 0)))
    else:
        out_shape2 = jax.ShapeDtypeStruct((BN, C), cdt)
        out_specs2 = pl.BlockSpec((N, C), lambda b: (b, 0))
    res2 = pl.pallas_call(
        attn_kernel,
        out_shape=out_shape2,
        grid=(B,),
        in_specs=[seq_spec, seq_spec, seq_spec],
        out_specs=out_specs2,
        compiler_params=parallel1,
    )(q2d, k2d, v2d)
    if return_attn:
        attn, o2d = res2
    else:
        attn, o2d = None, res2

    # -------- kernel 3: out-proj + residual + LN2 + MLP (Hd tiled) + residual --------
    out2d = pl.pallas_call(
        _proj_mlp_kernel,
        out_shape=jax.ShapeDtypeStruct((BN, C), f32),
        grid=(BN // tm, Hd // hd_t),
        in_specs=[
            pl.BlockSpec((tm, C), lambda i, j: (i, 0)),    # x (residual 1, f32)
            pl.BlockSpec((tm, C), lambda i, j: (i, 0)),    # merged attention output
            pl.BlockSpec((C, C), lambda i, j: (0, 0)),     # proj weight
            pl.BlockSpec((1, C), lambda i, j: (0, 0)),     # proj bias
            pl.BlockSpec((1, C), lambda i, j: (0, 0)),     # norm2 gamma
            pl.BlockSpec((1, C), lambda i, j: (0, 0)),     # norm2 beta
            pl.BlockSpec((C, hd_t), lambda i, j: (0, j)),  # fc1 weight tile
            pl.BlockSpec((1, hd_t), lambda i, j: (0, j)),  # fc1 bias tile
            pl.BlockSpec((hd_t, C), lambda i, j: (j, 0)),  # fc2 weight tile
            pl.BlockSpec((1, C), lambda i, j: (0, 0)),     # fc2 bias
        ],
        out_specs=pl.BlockSpec((tm, C), lambda i, j: (i, 0)),
        scratch_shapes=[pltpu.VMEM((tm, C), f32),          # x1 (residual 2)
                        pltpu.VMEM((tm, C), cdt),          # LN2(x1), compute dtype
                        pltpu.VMEM((tm, C), f32)],         # MLP accumulator
        compiler_params=pltpu.CompilerParams(
            dimension_semantics=("parallel", "arbitrary")),
    )(x2d, o2d, wproj_t, bproj, n2w, n2b, w1_t, b1, w2_t, b2)

    out = out2d.reshape(B, N, C)
    return (out, attn) if return_attn else (out, None)


def reference_transformer_encoder_layer(x, params, num_heads):
    """Pure-JAX f32 reference mirroring the PyTorch forward."""
    B, N, C = x.shape
    D = C // num_heads
    scale = D ** (-0.5)

    def ln(z, g, b):
        mu = z.mean(-1, keepdims=True)
        var = ((z - mu) ** 2).mean(-1, keepdims=True)
        return (z - mu) / jnp.sqrt(var + LN_EPS) * g + b

    xn1 = ln(x, params["n1w"], params["n1b"])
    qkv = xn1 @ params["wqkv"].T
    qkv = qkv.reshape(B, N, 3, num_heads, D).transpose(2, 0, 3, 1, 4)
    q, k, v = qkv[0], qkv[1], qkv[2]
    attn = jnp.einsum("bhnd,bhmd->bhnm", q, k) * scale
    attn = jax.nn.softmax(attn, axis=-1)
    o = jnp.einsum("bhnm,bhmd->bhnd", attn, v)
    o = o.transpose(0, 2, 1, 3).reshape(B, N, C)
    x1 = x + o @ params["wproj"].T + params["bproj"]
    xn2 = ln(x1, params["n2w"], params["n2b"])
    h = jax.nn.gelu(xn2 @ params["w1"].T + params["b1"], approximate=False)
    out = x1 + h @ params["w2"].T + params["b2"]
    return out, attn


if __name__ == "__main__":
    # Small shapes consistent with the module; chosen so every grid (token tiles,
    # batch, MLP-hidden reduction) has >= 2 steps: B=2, N=16, C=64, 4 heads,
    # mlp_ratio=4 -> hidden=256.
    B, N, C, H = 2, 16, 64, 4
    Hd = int(C * 4.0)

    key = jax.random.PRNGKey(0)
    ks = jax.random.split(key, 12)
    x = jax.random.normal(ks[0], (B, N, C), dtype=jnp.float32)
    params = dict(
        n1w=1.0 + 0.1 * jax.random.normal(ks[1], (C,), jnp.float32),
        n1b=0.05 * jax.random.normal(ks[2], (C,), jnp.float32),
        wqkv=jax.random.normal(ks[3], (3 * C, C), jnp.float32) / (C ** 0.5),
        wproj=jax.random.normal(ks[4], (C, C), jnp.float32) / (C ** 0.5),
        bproj=0.02 * jax.random.normal(ks[5], (C,), jnp.float32),
        n2w=1.0 + 0.1 * jax.random.normal(ks[6], (C,), jnp.float32),
        n2b=0.05 * jax.random.normal(ks[7], (C,), jnp.float32),
        w1=jax.random.normal(ks[8], (Hd, C), jnp.float32) / (C ** 0.5),
        b1=0.02 * jax.random.normal(ks[9], (Hd,), jnp.float32),
        w2=jax.random.normal(ks[10], (C, Hd), jnp.float32) / (Hd ** 0.5),
        b2=0.02 * jax.random.normal(ks[11], (C,), jnp.float32),
    )

    # f32 compute path: bit-tight check against the f32 reference.
    out_f32, attn_f32 = transformer_encoder_layer(x, params, num_heads=H,
                                                  compute_dtype=jnp.float32)
    # bf16 production path (default): loose check (bf16 MXU dots, bf16 attn map).
    out_bf, attn_bf = transformer_encoder_layer(x, params, num_heads=H)
    # Optional: attention-map output disabled (saves the dominant HBM write).
    out_na, attn_na = transformer_encoder_layer(x, params, num_heads=H, return_attn=False)
    jax.block_until_ready((out_f32, attn_f32, out_bf, attn_bf, out_na))

    ref_out, ref_attn = reference_transformer_encoder_layer(x, params, num_heads=H)

    assert out_f32.shape == (B, N, C) and attn_f32.shape == (B, H, N, N)
    assert attn_na is None and out_na.shape == (B, N, C)

    assert jnp.allclose(attn_f32, ref_attn, atol=1e-4, rtol=1e-4), \
        float(jnp.max(jnp.abs(attn_f32 - ref_attn)))
    assert jnp.allclose(out_f32, ref_out, atol=1e-4, rtol=1e-4), \
        float(jnp.max(jnp.abs(out_f32 - ref_out)))

    assert jnp.allclose(attn_bf.astype(jnp.float32), ref_attn, atol=5e-2, rtol=5e-2), \
        float(jnp.max(jnp.abs(attn_bf.astype(jnp.float32) - ref_attn)))
    assert jnp.allclose(out_bf, ref_out, atol=2e-1, rtol=5e-2), \
        float(jnp.max(jnp.abs(out_bf - ref_out)))
    assert jnp.allclose(out_na, ref_out, atol=2e-1, rtol=5e-2), \
        float(jnp.max(jnp.abs(out_na - ref_out)))

    print("KERNEL_OK")
</pallas_src>

<mosaic_0001>
module attributes {stable_mosaic.version = 11 : i64} {
  func.func @_ln_qkv_kernel(%arg0: i32, %arg1: memref<16x64xf32, #tpu.memory_space<vmem>>, %arg2: memref<1x64xf32, #tpu.memory_space<vmem>>, %arg3: memref<1x64xf32, #tpu.memory_space<vmem>>, %arg4: memref<64x64xf32, #tpu.memory_space<vmem>>, %arg5: memref<64x64xf32, #tpu.memory_space<vmem>>, %arg6: memref<64x64xf32, #tpu.memory_space<vmem>>, %arg7: memref<16x64xf32, #tpu.memory_space<vmem>>, %arg8: memref<16x64xf32, #tpu.memory_space<vmem>>, %arg9: memref<16x64xf32, #tpu.memory_space<vmem>>) attributes {dimension_semantics = [#tpu.dimension_semantics<parallel>], iteration_bounds = array<i64: 2>, scalar_prefetch = 0 : i64, scratch_operands = 0 : i64, tpu.core_type = #tpu.core_type<tc>, window_params = [{transform_indices = @transform_0, window_bounds = array<i64: 16, 64>}, {pipeline_mode = #tpu.pipeline_mode<synchronous>, transform_indices = @transform_1, window_bounds = array<i64: 1, 64>}, {pipeline_mode = #tpu.pipeline_mode<synchronous>, transform_indices = @transform_2, window_bounds = array<i64: 1, 64>}, {pipeline_mode = #tpu.pipeline_mode<synchronous>, transform_indices = @transform_3, window_bounds = array<i64: 64, 64>}, {pipeline_mode = #tpu.pipeline_mode<synchronous>, transform_indices = @transform_4, window_bounds = array<i64: 64, 64>}, {pipeline_mode = #tpu.pipeline_mode<synchronous>, transform_indices = @transform_5, window_bounds = array<i64: 64, 64>}, {transform_indices = @transform_6, window_bounds = array<i64: 16, 64>}, {transform_indices = @transform_7, window_bounds = array<i64: 16, 64>}, {transform_indices = @transform_8, window_bounds = array<i64: 16, 64>}]} {
    %c0 = arith.constant 0 : index
    %c0_0 = arith.constant 0 : index
    %0 = vector.load %arg1[%c0, %c0_0] : memref<16x64xf32, #tpu.memory_space<vmem>>, vector<16x64xf32>
    %c0_1 = arith.constant 0 : index
    %c0_2 = arith.constant 0 : index
    %1 = vector.load %arg2[%c0_1, %c0_2] : memref<1x64xf32, #tpu.memory_space<vmem>>, vector<1x64xf32>
    %c0_3 = arith.constant 0 : index
    %c0_4 = arith.constant 0 : index
    %2 = vector.load %arg3[%c0_3, %c0_4] : memref<1x64xf32, #tpu.memory_space<vmem>>, vector<1x64xf32>
    %cst = arith.constant dense<0.000000e+00> : vector<16xf32>
    %3 = vector.multi_reduction <add>, %0, %cst [1] : vector<16x64xf32> to vector<16xf32>
    %4 = vector.shape_cast %3 : vector<16xf32> to vector<16x1xf32>
    %cst_5 = arith.constant 6.400000e+01 : f32
    %5 = vector.broadcast %cst_5 : f32 to vector<16x1xf32>
    %6 = arith.divf %4, %5 : vector<16x1xf32>
    %7 = vector.broadcast %6 : vector<16x1xf32> to vector<16x64xf32>
    %8 = arith.subf %0, %7 : vector<16x64xf32>
    %9 = arith.mulf %8, %8 : vector<16x64xf32>
    %cst_6 = arith.constant dense<0.000000e+00> : vector<16xf32>
    %10 = vector.multi_reduction <add>, %9, %cst_6 [1] : vector<16x64xf32> to vector<16xf32>
    %11 = vector.shape_cast %10 : vector<16xf32> to vector<16x1xf32>
    %cst_7 = arith.constant 6.400000e+01 : f32
    %12 = vector.broadcast %cst_7 : f32 to vector<16x1xf32>
    %13 = arith.divf %11, %12 : vector<16x1xf32>
    %cst_8 = arith.constant 9.99999974E-6 : f32
    %14 = vector.broadcast %cst_8 : f32 to vector<16x1xf32>
    %15 = arith.addf %13, %14 : vector<16x1xf32>
    %16 = math.rsqrt %15 : vector<16x1xf32>
    %17 = vector.broadcast %16 : vector<16x1xf32> to vector<16x64xf32>
    %18 = arith.mulf %8, %17 : vector<16x64xf32>
    %19 = vector.broadcast %1 : vector<1x64xf32> to vector<16x64xf32>
    %20 = arith.mulf %18, %19 : vector<16x64xf32>
    %21 = vector.broadcast %2 : vector<1x64xf32> to vector<16x64xf32>
    %22 = arith.addf %20, %21 : vector<16x64xf32>
    %c0_9 = arith.constant 0 : index
    %c0_10 = arith.constant 0 : index
    %23 = vector.load %arg4[%c0_9, %c0_10] : memref<64x64xf32, #tpu.memory_space<vmem>>, vector<64x64xf32>
    %cst_11 = arith.constant dense<0.000000e+00> : vector<16x64xf32>
    %24 = tpu.matmul %22, %23, %cst_11 {dimension_numbers = #tpu.dot_dimension_numbers<[1], [0], [0], [1], [0, 0, 1, 1], [], []>} : vector<16x64xf32>, vector<64x64xf32>, vector<16x64xf32> -> vector<16x64xf32>
    %c0_12 = arith.constant 0 : index
    %c0_13 = arith.constant 0 : index
    %25 = vector.load %arg7[%c0_12, %c0_13] : memref<16x64xf32, #tpu.memory_space<vmem>>, vector<16x64xf32>
    tpu.vector_store %arg7[%c0_12, %c0_13], %24 {strides = array<i32>} : memref<16x64xf32, #tpu.memory_space<vmem>>, vector<16x64xf32>,
    %c0_14 = arith.constant 0 : index
    %c0_15 = arith.constant 0 : index
    %26 = vector.load %arg5[%c0_14, %c0_15] : memref<64x64xf32, #tpu.memory_space<vmem>>, vector<64x64xf32>
    %cst_16 = arith.constant dense<0.000000e+00> : vector<16x64xf32>
    %27 = tpu.matmul %22, %26, %cst_16 {dimension_numbers = #tpu.dot_dimension_numbers<[1], [0], [0], [1], [0, 0, 1, 1], [], []>} : vector<16x64xf32>, vector<64x64xf32>, vector<16x64xf32> -> vector<16x64xf32>
    %c0_17 = arith.constant 0 : index
    %c0_18 = arith.constant 0 : index
    %28 = vector.load %arg8[%c0_17, %c0_18] : memref<16x64xf32, #tpu.memory_space<vmem>>, vector<16x64xf32>
    tpu.vector_store %arg8[%c0_17, %c0_18], %27 {strides = array<i32>} : memref<16x64xf32, #tpu.memory_space<vmem>>, vector<16x64xf32>,
    %c0_19 = arith.constant 0 : index
    %c0_20 = arith.constant 0 : index
    %29 = vector.load %arg6[%c0_19, %c0_20] : memref<64x64xf32, #tpu.memory_space<vmem>>, vector<64x64xf32>
    %cst_21 = arith.constant dense<0.000000e+00> : vector<16x64xf32>
    %30 = tpu.matmul %22, %29, %cst_21 {dimension_numbers = #tpu.dot_dimension_numbers<[1], [0], [0], [1], [0, 0, 1, 1], [], []>} : vector<16x64xf32>, vector<64x64xf32>, vector<16x64xf32> -> vector<16x64xf32>
    %c0_22 = arith.constant 0 : index
    %c0_23 = arith.constant 0 : index
    %31 = vector.load %arg9[%c0_22, %c0_23] : memref<16x64xf32, #tpu.memory_space<vmem>>, vector<16x64xf32>
    tpu.vector_store %arg9[%c0_22, %c0_23], %30 {strides = array<i32>} : memref<16x64xf32, #tpu.memory_space<vmem>>, vector<16x64xf32>,
    return
  }
  func.func @transform_0(%arg0: i32) -> (i32, i32) {
    %c0_i32 = arith.constant 0 : i32
    %c0_i32_0 = arith.constant 0 : i32
    return %arg0, %c0_i32 : i32, i32
  }
  func.func @transform_1(%arg0: i32) -> (i32, i32) {
    %c0_i32 = arith.constant 0 : i32
    %c0_i32_0 = arith.constant 0 : i32
    %c0_i32_1 = arith.constant 0 : i32
    return %c0_i32, %c0_i32_0 : i32, i32
  }
  func.func @transform_2(%arg0: i32) -> (i32, i32) {
    %c0_i32 = arith.constant 0 : i32
    %c0_i32_0 = arith.constant 0 : i32
    %c0_i32_1 = arith.constant 0 : i32
    return %c0_i32, %c0_i32_0 : i32, i32
  }
  func.func @transform_3(%arg0: i32) -> (i32, i32) {
    %c0_i32 = arith.constant 0 : i32
    %c0_i32_0 = arith.constant 0 : i32
    %c0_i32_1 = arith.constant 0 : i32
    return %c0_i32, %c0_i32_0 : i32, i32
  }
  func.func @transform_4(%arg0: i32) -> (i32, i32) {
    %c0_i32 = arith.constant 0 : i32
    %c0_i32_0 = arith.constant 0 : i32
    %c0_i32_1 = arith.constant 0 : i32
    return %c0_i32, %c0_i32_0 : i32, i32
  }
  func.func @transform_5(%arg0: i32) -> (i32, i32) {
    %c0_i32 = arith.constant 0 : i32
    %c0_i32_0 = arith.constant 0 : i32
    %c0_i32_1 = arith.constant 0 : i32
    return %c0_i32, %c0_i32_0 : i32, i32
  }
  func.func @transform_6(%arg0: i32) -> (i32, i32) {
    %c0_i32 = arith.constant 0 : i32
    %c0_i32_0 = arith.constant 0 : i32
    return %arg0, %c0_i32 : i32, i32
  }
  func.func @transform_7(%arg0: i32) -> (i32, i32) {
    %c0_i32 = arith.constant 0 : i32
    %c0_i32_0 = arith.constant 0 : i32
    return %arg0, %c0_i32 : i32, i32
  }
  func.func @transform_8(%arg0: i32) -> (i32, i32) {
    %c0_i32 = arith.constant 0 : i32
    %c0_i32_0 = arith.constant 0 : i32
    return %arg0, %c0_i32 : i32, i32
  }
}

module attributes {stable_mosaic.version = 11 : i64} {
  func.func @_attention_kernel(%arg0: i32, %arg1: memref<16x64xf32, #tpu.memory_space<vmem>>, %arg2: memref<16x64xf32, #tpu.memory_space<vmem>>, %arg3: memref<16x64xf32, #tpu.memory_space<vmem>>, %arg4: memref<1x4x16x16xf32, #tpu.memory_space<vmem>>, %arg5: memref<16x64xf32, #tpu.memory_space<vmem>>) attributes {dimension_semantics = [#tpu.dimension_semantics<parallel>], iteration_bounds = array<i64: 2>, scalar_prefetch = 0 : i64, scratch_operands = 0 : i64, tpu.core_type = #tpu.core_type<tc>, window_params = [{transform_indices = @transform_0, window_bounds = array<i64: 16, 64>}, {transform_indices = @transform_1, window_bounds = array<i64: 16, 64>}, {transform_indices = @transform_2, window_bounds = array<i64: 16, 64>}, {transform_indices = @transform_3, window_bounds = array<i64: 1, 4, 16, 16>}, {transform_indices = @transform_4, window_bounds = array<i64: 16, 64>}]} {
    %c0 = arith.constant 0 : index
    %c0_0 = arith.constant 0 : index
    %0 = vector.load %arg1[%c0, %c0_0] : memref<16x64xf32, #tpu.memory_space<vmem>>, vector<16x64xf32>
    %c0_1 = arith.constant 0 : index
    %c0_2 = arith.constant 0 : index
    %1 = vector.load %arg2[%c0_1, %c0_2] : memref<16x64xf32, #tpu.memory_space<vmem>>, vector<16x64xf32>
    %c0_3 = arith.constant 0 : index
    %c0_4 = arith.constant 0 : index
    %2 = vector.load %arg3[%c0_3, %c0_4] : memref<16x64xf32, #tpu.memory_space<vmem>>, vector<16x64xf32>
    %3 = vector.extract_strided_slice %0 {offsets = [0, 0], sizes = [16, 16], strides = [1, 1]} : vector<16x64xf32> to vector<16x16xf32>
    %4 = vector.extract_strided_slice %1 {offsets = [0, 0], sizes = [16, 16], strides = [1, 1]} : vector<16x64xf32> to vector<16x16xf32>
    "tpu.trace_start"() <{level = 10 : i32, message = "nd,md->nm"}> : () -> ()
    %cst = arith.constant dense<0.000000e+00> : vector<16x16xf32>
    %5 = tpu.matmul %3, %4, %cst {dimension_numbers = #tpu.dot_dimension_numbers<[1], [1], [0], [0], [0, 0, 1, 0], [], []>} : vector<16x16xf32>, vector<16x16xf32>, vector<16x16xf32> -> vector<16x16xf32>
    "tpu.trace_stop"() : () -> ()
    %cst_5 = arith.constant dense<0xFF800000> : vector<16xf32>
    %6 = vector.multi_reduction <maximumf>, %5, %cst_5 [1] : vector<16x16xf32> to vector<16xf32>
    %7 = vector.shape_cast %6 : vector<16xf32> to vector<16x1xf32>
    %8 = vector.broadcast %7 : vector<16x1xf32> to vector<16x16xf32>
    %9 = arith.subf %5, %8 : vector<16x16xf32>
    %10 = math.exp %9 : vector<16x16xf32>
    %cst_6 = arith.constant dense<0.000000e+00> : vector<16xf32>
    %11 = vector.multi_reduction <add>, %10, %cst_6 [1] : vector<16x16xf32> to vector<16xf32>
    %12 = vector.shape_cast %11 : vector<16xf32> to vector<16x1xf32>
    %13 = tpu.reciprocal %12 : vector<16x1xf32> -> vector<16x1xf32>
    %14 = vector.broadcast %13 : vector<16x1xf32> to vector<16x16xf32>
    %15 = arith.mulf %10, %14 : vector<16x16xf32>
    %c0_7 = arith.constant 0 : index
    %c0_8 = arith.constant 0 : index
    %c0_9 = arith.constant 0 : index
    %c0_10 = arith.constant 0 : index
    %16 = vector.load %arg4[%c0_7, %c0_8, %c0_9, %c0_10] : memref<1x4x16x16xf32, #tpu.memory_space<vmem>>, vector<1x1x16x16xf32>
    %17 = vector.shape_cast %16 : vector<1x1x16x16xf32> to vector<16x16xf32>
    %18 = vector.shape_cast %15 : vector<16x16xf32> to vector<1x1x16x16xf32>
    tpu.vector_store %arg4[%c0_7, %c0_8, %c0_9, %c0_10], %18 {strides = array<i32>} : memref<1x4x16x16xf32, #tpu.memory_space<vmem>>, vector<1x1x16x16xf32>,
    %19 = vector.extract_strided_slice %2 {offsets = [0, 0], sizes = [16, 16], strides = [1, 1]} : vector<16x64xf32> to vector<16x16xf32>
    %cst_11 = arith.constant dense<0.000000e+00> : vector<16x16xf32>
    %20 = tpu.matmul %15, %19, %cst_11 {dimension_numbers = #tpu.dot_dimension_numbers<[1], [0], [0], [1], [0, 0, 1, 1], [], []>} : vector<16x16xf32>, vector<16x16xf32>, vector<16x16xf32> -> vector<16x16xf32>
    %21 = vector.extract_strided_slice %0 {offsets = [0, 16], sizes = [16, 16], strides = [1, 1]} : vector<16x64xf32> to vector<16x16xf32>
    %22 = vector.extract_strided_slice %1 {offsets = [0, 16], sizes = [16, 16], strides = [1, 1]} : vector<16x64xf32> to vector<16x16xf32>
    "tpu.trace_start"() <{level = 10 : i32, message = "nd,md->nm"}> : () -> ()
    %cst_12 = arith.constant dense<0.000000e+00> : vector<16x16xf32>
    %23 = tpu.matmul %21, %22, %cst_12 {dimension_numbers = #tpu.dot_dimension_numbers<[1], [1], [0], [0], [0, 0, 1, 0], [], []>} : vector<16x16xf32>, vector<16x16xf32>, vector<16x16xf32> -> vector<16x16xf32>
    "tpu.trace_stop"() : () -> ()
    %cst_13 = arith.constant dense<0xFF800000> : vector<16xf32>
    %24 = vector.multi_reduction <maximumf>, %23, %cst_13 [1] : vector<16x16xf32> to vector<16xf32>
    %25 = vector.shape_cast %24 : vector<16xf32> to vector<16x1xf32>
    %26 = vector.broadcast %25 : vector<16x1xf32> to vector<16x16xf32>
    %27 = arith.subf %23, %26 : vector<16x16xf32>
    %28 = math.exp %27 : vector<16x16xf32>
    %cst_14 = arith.constant dense<0.000000e+00> : vector<16xf32>
    %29 = vector.multi_reduction <add>, %28, %cst_14 [1] : vector<16x16xf32> to vector<16xf32>
    %30 = vector.shape_cast %29 : vector<16xf32> to vector<16x1xf32>
    %31 = tpu.reciprocal %30 : vector<16x1xf32> -> vector<16x1xf32>
    %32 = vector.broadcast %31 : vector<16x1xf32> to vector<16x16xf32>
    %33 = arith.mulf %28, %32 : vector<16x16xf32>
    %c0_15 = arith.constant 0 : index
    %c1 = arith.constant 1 : index
    %c0_16 = arith.constant 0 : index
    %c0_17 = arith.constant 0 : index
    %34 = vector.load %arg4[%c0_15, %c1, %c0_16, %c0_17] : memref<1x4x16x16xf32, #tpu.memory_space<vmem>>, vector<1x1x16x16xf32>
    %35 = vector.shape_cast %34 : vector<1x1x16x16xf32> to vector<16x16xf32>
    %36 = vector.shape_cast %33 : vector<16x16xf32> to vector<1x1x16x16xf32>
    tpu.vector_store %arg4[%c0_15, %c1, %c0_16, %c0_17], %36 {strides = array<i32>} : memref<1x4x16x16xf32, #tpu.memory_space<vmem>>, vector<1x1x16x16xf32>,
    %37 = vector.extract_strided_slice %2 {offsets = [0, 16], sizes = [16, 16], strides = [1, 1]} : vector<16x64xf32> to vector<16x16xf32>
    %cst_18 = arith.constant dense<0.000000e+00> : vector<16x16xf32>
    %38 = tpu.matmul %33, %37, %cst_18 {dimension_numbers = #tpu.dot_dimension_numbers<[1], [0], [0], [1], [0, 0, 1, 1], [], []>} : vector<16x16xf32>, vector<16x16xf32>, vector<16x16xf32> -> vector<16x16xf32>
    %39 = vector.extract_strided_slice %0 {offsets = [0, 32], sizes = [16, 16], strides = [1, 1]} : vector<16x64xf32> to vector<16x16xf32>
    %40 = vector.extract_strided_slice %1 {offsets = [0, 32], sizes = [16, 16], strides = [1, 1]} : vector<16x64xf32> to vector<16x16xf32>
    "tpu.trace_start"() <{level = 10 : i32, message = "nd,md->nm"}> : () -> ()
    %cst_19 = arith.constant dense<0.000000e+00> : vector<16x16xf32>
    %41 = tpu.matmul %39, %40, %cst_19 {dimension_numbers = #tpu.dot_dimension_numbers<[1], [1], [0], [0], [0, 0, 1, 0], [], []>} : vector<16x16xf32>, vector<16x16xf32>, vector<16x16xf32> -> vector<16x16xf32>
    "tpu.trace_stop"() : () -> ()
    %cst_20 = arith.constant dense<0xFF800000> : vector<16xf32>
    %42 = vector.multi_reduction <maximumf>, %41, %cst_20 [1] : vector<16x16xf32> to vector<16xf32>
    %43 = vector.shape_cast %42 : vector<16xf32> to vector<16x1xf32>
    %44 = vector.broadcast %43 : vector<16x1xf32> to vector<16x16xf32>
    %45 = arith.subf %41, %44 : vector<16x16xf32>
    %46 = math.exp %45 : vector<16x16xf32>
    %cst_21 = arith.constant dense<0.000000e+00> : vector<16xf32>
    %47 = vector.multi_reduction <add>, %46, %cst_21 [1] : vector<16x16xf32> to vector<16xf32>
    %48 = vector.shape_cast %47 : vector<16xf32> to vector<16x1xf32>
    %49 = tpu.reciprocal %48 : vector<16x1xf32> -> vector<16x1xf32>
    %50 = vector.broadcast %49 : vector<16x1xf32> to vector<16x16xf32>
    %51 = arith.mulf %46, %50 : vector<16x16xf32>
    %c0_22 = arith.constant 0 : index
    %c2 = arith.constant 2 : index
    %c0_23 = arith.constant 0 : index
    %c0_24 = arith.constant 0 : index
    %52 = vector.load %arg4[%c0_22, %c2, %c0_23, %c0_24] : memref<1x4x16x16xf32, #tpu.memory_space<vmem>>, vector<1x1x16x16xf32>
    %53 = vector.shape_cast %52 : vector<1x1x16x16xf32> to vector<16x16xf32>
    %54 = vector.shape_cast %51 : vector<16x16xf32> to vector<1x1x16x16xf32>
    tpu.vector_store %arg4[%c0_22, %c2, %c0_23, %c0_24], %54 {strides = array<i32>} : memref<1x4x16x16xf32, #tpu.memory_space<vmem>>, vector<1x1x16x16xf32>,
    %55 = vector.extract_strided_slice %2 {offsets = [0, 32], sizes = [16, 16], strides = [1, 1]} : vector<16x64xf32> to vector<16x16xf32>
    %cst_25 = arith.constant dense<0.000000e+00> : vector<16x16xf32>
    %56 = tpu.matmul %51, %55, %cst_25 {dimension_numbers = #tpu.dot_dimension_numbers<[1], [0], [0], [1], [0, 0, 1, 1], [], []>} : vector<16x16xf32>, vector<16x16xf32>, vector<16x16xf32> -> vector<16x16xf32>
    %57 = vector.extract_strided_slice %0 {offsets = [0, 48], sizes = [16, 16], strides = [1, 1]} : vector<16x64xf32> to vector<16x16xf32>
    %58 = vector.extract_strided_slice %1 {offsets = [0, 48], sizes = [16, 16], strides = [1, 1]} : vector<16x64xf32> to vector<16x16xf32>
    "tpu.trace_start"() <{level = 10 : i32, message = "nd,md->nm"}> : () -> ()
    %cst_26 = arith.constant dense<0.000000e+00> : vector<16x16xf32>
    %59 = tpu.matmul %57, %58, %cst_26 {dimension_numbers = #tpu.dot_dimension_numbers<[1], [1], [0], [0], [0, 0, 1, 0], [], []>} : vector<16x16xf32>, vector<16x16xf32>, vector<16x16xf32> -> vector<16x16xf32>
    "tpu.trace_stop"() : () -> ()
    %cst_27 = arith.constant dense<0xFF800000> : vector<16xf32>
    %60 = vector.multi_reduction <maximumf>, %59, %cst_27 [1] : vector<16x16xf32> to vector<16xf32>
    %61 = vector.shape_cast %60 : vector<16xf32> to vector<16x1xf32>
    %62 = vector.broadcast %61 : vector<16x1xf32> to vector<16x16xf32>
    %63 = arith.subf %59, %62 : vector<16x16xf32>
    %64 = math.exp %63 : vector<16x16xf32>
    %cst_28 = arith.constant dense<0.000000e+00> : vector<16xf32>
    %65 = vector.multi_reduction <add>, %64, %cst_28 [1] : vector<16x16xf32> to vector<16xf32>
    %66 = vector.shape_cast %65 : vector<16xf32> to vector<16x1xf32>
    %67 = tpu.reciprocal %66 : vector<16x1xf32> -> vector<16x1xf32>
    %68 = vector.broadcast %67 : vector<16x1xf32> to vector<16x16xf32>
    %69 = arith.mulf %64, %68 : vector<16x16xf32>
    %c0_29 = arith.constant 0 : index
    %c3 = arith.constant 3 : index
    %c0_30 = arith.constant 0 : index
    %c0_31 = arith.constant 0 : index
    %70 = vector.load %arg4[%c0_29, %c3, %c0_30, %c0_31] : memref<1x4x16x16xf32, #tpu.memory_space<vmem>>, vector<1x1x16x16xf32>
    %71 = vector.shape_cast %70 : vector<1x1x16x16xf32> to vector<16x16xf32>
    %72 = vector.shape_cast %69 : vector<16x16xf32> to vector<1x1x16x16xf32>
    tpu.vector_store %arg4[%c0_29, %c3, %c0_30, %c0_31], %72 {strides = array<i32>} : memref<1x4x16x16xf32, #tpu.memory_space<vmem>>, vector<1x1x16x16xf32>,
    %73 = vector.extract_strided_slice %2 {offsets = [0, 48], sizes = [16, 16], strides = [1, 1]} : vector<16x64xf32> to vector<16x16xf32>
    %cst_32 = arith.constant dense<0.000000e+00> : vector<16x16xf32>
    %74 = tpu.matmul %69, %73, %cst_32 {dimension_numbers = #tpu.dot_dimension_numbers<[1], [0], [0], [1], [0, 0, 1, 1], [], []>} : vector<16x16xf32>, vector<16x16xf32>, vector<16x16xf32> -> vector<16x16xf32>
    %75 = tpu.concatenate %20, %38, %56, %74 in 1 : vector<16x16xf32>, vector<16x16xf32>, vector<16x16xf32>, vector<16x16xf32> -> vector<16x64xf32>
    %c0_33 = arith.constant 0 : index
    %c0_34 = arith.constant 0 : index
    %76 = vector.load %arg5[%c0_33, %c0_34] : memref<16x64xf32, #tpu.memory_space<vmem>>, vector<16x64xf32>
    tpu.vector_store %arg5[%c0_33, %c0_34], %75 {strides = array<i32>} : memref<16x64xf32, #tpu.memory_space<vmem>>, vector<16x64xf32>,
    return
  }
  func.func @transform_0(%arg0: i32) -> (i32, i32) {
    %c0_i32 = arith.constant 0 : i32
    %c0_i32_0 = arith.constant 0 : i32
    return %arg0, %c0_i32 : i32, i32
  }
  func.func @transform_1(%arg0: i32) -> (i32, i32) {
    %c0_i32 = arith.constant 0 : i32
    %c0_i32_0 = arith.constant 0 : i32
    return %arg0, %c0_i32 : i32, i32
  }
  func.func @transform_2(%arg0: i32) -> (i32, i32) {
    %c0_i32 = arith.constant 0 : i32
    %c0_i32_0 = arith.constant 0 : i32
    return %arg0, %c0_i32 : i32, i32
  }
  func.func @transform_3(%arg0: i32) -> (i32, i32, i32, i32) {
    %c0_i32 = arith.constant 0 : i32
    %c0_i32_0 = arith.constant 0 : i32
    %c0_i32_1 = arith.constant 0 : i32
    %c0_i32_2 = arith.constant 0 : i32
    return %arg0, %c0_i32, %c0_i32_0, %c0_i32_1 : i32, i32, i32, i32
  }
  func.func @transform_4(%arg0: i32) -> (i32, i32) {
    %c0_i32 = arith.constant 0 : i32
    %c0_i32_0 = arith.constant 0 : i32
    return %arg0, %c0_i32 : i32, i32
  }
}

module attributes {stable_mosaic.version = 11 : i64} {
  func.func @_proj_mlp_kernel(%arg0: i32, %arg1: i32, %arg2: memref<16x64xf32, #tpu.memory_space<vmem>>, %arg3: memref<16x64xf32, #tpu.memory_space<vmem>>, %arg4: memref<64x64xf32, #tpu.memory_space<vmem>>, %arg5: memref<1x64xf32, #tpu.memory_space<vmem>>, %arg6: memref<1x64xf32, #tpu.memory_space<vmem>>, %arg7: memref<1x64xf32, #tpu.memory_space<vmem>>, %arg8: memref<64x128xf32, #tpu.memory_space<vmem>>, %arg9: memref<1x128xf32, #tpu.memory_space<vmem>>, %arg10: memref<128x64xf32, #tpu.memory_space<vmem>>, %arg11: memref<1x64xf32, #tpu.memory_space<vmem>>, %arg12: memref<16x64xf32, #tpu.memory_space<vmem>>, %arg13: memref<16x64xf32, #tpu.memory_space<vmem>>, %arg14: memref<16x64xf32, #tpu.memory_space<vmem>>, %arg15: memref<16x64xf32, #tpu.memory_space<vmem>>) attributes {dimension_semantics = [#tpu.dimension_semantics<parallel>, #tpu.dimension_semantics<arbitrary>], iteration_bounds = array<i64: 2, 2>, scalar_prefetch = 0 : i64, scratch_operands = 3 : i64, tpu.core_type = #tpu.core_type<tc>, window_params = [{transform_indices = @transform_0, window_bounds = array<i64: 16, 64>}, {transform_indices = @transform_1, window_bounds = array<i64: 16, 64>}, {pipeline_mode = #tpu.pipeline_mode<synchronous>, transform_indices = @transform_2, window_bounds = array<i64: 64, 64>}, {pipeline_mode = #tpu.pipeline_mode<synchronous>, transform_indices = @transform_3, window_bounds = array<i64: 1, 64>}, {pipeline_mode = #tpu.pipeline_mode<synchronous>, transform_indices = @transform_4, window_bounds = array<i64: 1, 64>}, {pipeline_mode = #tpu.pipeline_mode<synchronous>, transform_indices = @transform_5, window_bounds = array<i64: 1, 64>}, {transform_indices = @transform_6, window_bounds = array<i64: 64, 128>}, {transform_indices = @transform_7, window_bounds = array<i64: 1, 128>}, {transform_indices = @transform_8, window_bounds = array<i64: 128, 64>}, {pipeline_mode = #tpu.pipeline_mode<synchronous>, transform_indices = @transform_9, window_bounds = array<i64: 1, 64>}, {transform_indices = @transform_10, window_bounds = array<i64: 16, 64>}]} {
    %c0_i32 = arith.constant 0 : i32
    %0 = arith.cmpi eq, %arg1, %c0_i32 : i32
    %1 = arith.extui %0 : i1 to i32
    %c0_i32_0 = arith.constant 0 : i32
    %2 = arith.cmpi ne, %1, %c0_i32_0 : i32
    scf.if %2 {
      %c0_30 = arith.constant 0 : index
      %c0_31 = arith.constant 0 : index
      %58 = vector.load %arg2[%c0_30, %c0_31] : memref<16x64xf32, #tpu.memory_space<vmem>>, vector<16x64xf32>
      %c0_32 = arith.constant 0 : index
      %c0_33 = arith.constant 0 : index
      %59 = vector.load %arg3[%c0_32, %c0_33] : memref<16x64xf32, #tpu.memory_space<vmem>>, vector<16x64xf32>
      %c0_34 = arith.constant 0 : index
      %c0_35 = arith.constant 0 : index
      %60 = vector.load %arg4[%c0_34, %c0_35] : memref<64x64xf32, #tpu.memory_space<vmem>>, vector<64x64xf32>
      %cst_36 = arith.constant dense<0.000000e+00> : vector<16x64xf32>
      %61 = tpu.matmul %59, %60, %cst_36 {dimension_numbers = #tpu.dot_dimension_numbers<[1], [0], [0], [1], [0, 0, 1, 1], [], []>} : vector<16x64xf32>, vector<64x64xf32>, vector<16x64xf32> -> vector<16x64xf32>
      %62 = arith.addf %58, %61 : vector<16x64xf32>
      %c0_37 = arith.constant 0 : index
      %c0_38 = arith.constant 0 : index
      %63 = vector.load %arg5[%c0_37, %c0_38] : memref<1x64xf32, #tpu.memory_space<vmem>>, vector<1x64xf32>
      %64 = vector.broadcast %63 : vector<1x64xf32> to vector<16x64xf32>
      %65 = arith.addf %62, %64 : vector<16x64xf32>
      %c0_39 = arith.constant 0 : index
      %c0_40 = arith.constant 0 : index
      %66 = vector.load %arg13[%c0_39, %c0_40] : memref<16x64xf32, #tpu.memory_space<vmem>>, vector<16x64xf32>
      tpu.vector_store %arg13[%c0_39, %c0_40], %65 {strides = array<i32>} : memref<16x64xf32, #tpu.memory_space<vmem>>, vector<16x64xf32>,
      %c0_41 = arith.constant 0 : index
      %c0_42 = arith.constant 0 : index
      %67 = vector.load %arg6[%c0_41, %c0_42] : memref<1x64xf32, #tpu.memory_space<vmem>>, vector<1x64xf32>
      %c0_43 = arith.constant 0 : index
      %c0_44 = arith.constant 0 : index
      %68 = vector.load %arg7[%c0_43, %c0_44] : memref<1x64xf32, #tpu.memory_space<vmem>>, vector<1x64xf32>
      %cst_45 = arith.constant dense<0.000000e+00> : vector<16xf32>
      %69 = vector.multi_reduction <add>, %65, %cst_45 [1] : vector<16x64xf32> to vector<16xf32>
      %70 = vector.shape_cast %69 : vector<16xf32> to vector<16x1xf32>
      %cst_46 = arith.constant 6.400000e+01 : f32
      %71 = vector.broadcast %cst_46 : f32 to vector<16x1xf32>
      %72 = arith.divf %70, %71 : vector<16x1xf32>
      %73 = vector.broadcast %72 : vector<16x1xf32> to vector<16x64xf32>
      %74 = arith.subf %65, %73 : vector<16x64xf32>
      %75 = arith.mulf %74, %74 : vector<16x64xf32>
      %cst_47 = arith.constant dense<0.000000e+00> : vector<16xf32>
      %76 = vector.multi_reduction <add>, %75, %cst_47 [1] : vector<16x64xf32> to vector<16xf32>
      %77 = vector.shape_cast %76 : vector<16xf32> to vector<16x1xf32>
      %cst_48 = arith.constant 6.400000e+01 : f32
      %78 = vector.broadcast %cst_48 : f32 to vector<16x1xf32>
      %79 = arith.divf %77, %78 : vector<16x1xf32>
      %cst_49 = arith.constant 9.99999974E-6 : f32
      %80 = vector.broadcast %cst_49 : f32 to vector<16x1xf32>
      %81 = arith.addf %79, %80 : vector<16x1xf32>
      %82 = math.rsqrt %81 : vector<16x1xf32>
      %83 = vector.broadcast %82 : vector<16x1xf32> to vector<16x64xf32>
      %84 = arith.mulf %74, %83 : vector<16x64xf32>
      %85 = vector.broadcast %67 : vector<1x64xf32> to vector<16x64xf32>
      %86 = arith.mulf %84, %85 : vector<16x64xf32>
      %87 = vector.broadcast %68 : vector<1x64xf32> to vector<16x64xf32>
      %88 = arith.addf %86, %87 : vector<16x64xf32>
      %c0_50 = arith.constant 0 : index
      %c0_51 = arith.constant 0 : index
      %89 = vector.load %arg14[%c0_50, %c0_51] : memref<16x64xf32, #tpu.memory_space<vmem>>, vector<16x64xf32>
      tpu.vector_store %arg14[%c0_50, %c0_51], %88 {strides = array<i32>} : memref<16x64xf32, #tpu.memory_space<vmem>>, vector<16x64xf32>,
      %cst_52 = arith.constant 0.000000e+00 : f32
      %90 = vector.broadcast %cst_52 : f32 to vector<16x64xf32>
      %c0_53 = arith.constant 0 : index
      %c0_54 = arith.constant 0 : index
      %91 = vector.load %arg15[%c0_53, %c0_54] : memref<16x64xf32, #tpu.memory_space<vmem>>, vector<16x64xf32>
      tpu.vector_store %arg15[%c0_53, %c0_54], %90 {strides = array<i32>} : memref<16x64xf32, #tpu.memory_space<vmem>>, vector<16x64xf32>,
    } else {
    }
    %c0 = arith.constant 0 : index
    %c0_1 = arith.constant 0 : index
    %3 = vector.load %arg14[%c0, %c0_1] : memref<16x64xf32, #tpu.memory_space<vmem>>, vector<16x64xf32>
    %c0_2 = arith.constant 0 : index
    %c0_3 = arith.constant 0 : index
    %4 = vector.load %arg8[%c0_2, %c0_3] : memref<64x128xf32, #tpu.memory_space<vmem>>, vector<64x128xf32>
    %cst = arith.constant dense<0.000000e+00> : vector<16x128xf32>
    %5 = tpu.matmul %3, %4, %cst {dimension_numbers = #tpu.dot_dimension_numbers<[1], [0], [0], [1], [0, 0, 1, 1], [], []>} : vector<16x64xf32>, vector<64x128xf32>, vector<16x128xf32> -> vector<16x128xf32>
    %c0_4 = arith.constant 0 : index
    %c0_5 = arith.constant 0 : index
    %6 = vector.load %arg9[%c0_4, %c0_5] : memref<1x128xf32, #tpu.memory_space<vmem>>, vector<1x128xf32>
    %7 = vector.broadcast %6 : vector<1x128xf32> to vector<16x128xf32>
    %8 = arith.addf %5, %7 : vector<16x128xf32>
    %cst_6 = arith.constant 0.707106769 : f32
    %9 = vector.broadcast %cst_6 : f32 to vector<16x128xf32>
    %10 = arith.mulf %8, %9 : vector<16x128xf32>
    %cst_7 = arith.constant 0.000000e+00 : f32
    %11 = vector.broadcast %cst_7 : f32 to vector<16x128xf32>
    %12 = arith.cmpf oge, %10, %11 : vector<16x128xf32>
    %cst_8 = arith.constant 1.000000e+00 : f32
    %cst_9 = arith.constant -1.000000e+00 : f32
    %13 = vector.broadcast %cst_8 : f32 to vector<16x128xf32>
    %14 = vector.broadcast %cst_9 : f32 to vector<16x128xf32>
    %15 = arith.select %12, %13, %14 : vector<16x128xi1>, vector<16x128xf32>
    %16 = math.absf %10 : vector<16x128xf32>
    %cst_10 = arith.constant 0.327591091 : f32
    %17 = vector.broadcast %cst_10 : f32 to vector<16x128xf32>
    %18 = arith.mulf %17, %16 : vector<16x128xf32>
    %cst_11 = arith.constant 1.000000e+00 : f32
    %19 = vector.broadcast %cst_11 : f32 to vector<16x128xf32>
    %20 = arith.addf %19, %18 : vector<16x128xf32>
    %cst_12 = arith.constant 1.000000e+00 : f32
    %21 = vector.broadcast %cst_12 : f32 to vector<16x128xf32>
    %22 = arith.divf %21, %20 : vector<16x128xf32>
    %cst_13 = arith.constant 1.06140542 : f32
    %23 = vector.broadcast %cst_13 : f32 to vector<16x128xf32>
    %24 = arith.mulf %22, %23 : vector<16x128xf32>
    %cst_14 = arith.constant -1.45315206 : f32
    %25 = vector.broadcast %cst_14 : f32 to vector<16x128xf32>
    %26 = arith.addf %25, %24 : vector<16x128xf32>
    %27 = arith.mulf %22, %26 : vector<16x128xf32>
    %cst_15 = arith.constant 1.42141378 : f32
    %28 = vector.broadcast %cst_15 : f32 to vector<16x128xf32>
    %29 = arith.addf %28, %27 : vector<16x128xf32>
    %30 = arith.mulf %22, %29 : vector<16x128xf32>
    %cst_16 = arith.constant -0.284496725 : f32
    %31 = vector.broadcast %cst_16 : f32 to vector<16x128xf32>
    %32 = arith.addf %31, %30 : vector<16x128xf32>
    %33 = arith.mulf %22, %32 : vector<16x128xf32>
    %cst_17 = arith.constant 0.254829586 : f32
    %34 = vector.broadcast %cst_17 : f32 to vector<16x128xf32>
    %35 = arith.addf %34, %33 : vector<16x128xf32>
    %36 = arith.mulf %22, %35 : vector<16x128xf32>
    %cst_18 = arith.constant 0.000000e+00 : f32
    %37 = vector.broadcast %cst_18 : f32 to vector<16x128xf32>
    %38 = arith.subf %37, %16 : vector<16x128xf32>
    %39 = arith.mulf %38, %16 : vector<16x128xf32>
    %40 = math.exp %39 : vector<16x128xf32>
    %41 = arith.mulf %36, %40 : vector<16x128xf32>
    %cst_19 = arith.constant 1.000000e+00 : f32
    %42 = vector.broadcast %cst_19 : f32 to vector<16x128xf32>
    %43 = arith.subf %42, %41 : vector<16x128xf32>
    %44 = arith.mulf %15, %43 : vector<16x128xf32>
    %cst_20 = arith.constant 5.000000e-01 : f32
    %45 = vector.broadcast %cst_20 : f32 to vector<16x128xf32>
    %46 = arith.mulf %45, %8 : vector<16x128xf32>
    %cst_21 = arith.constant 1.000000e+00 : f32
    %47 = vector.broadcast %cst_21 : f32 to vector<16x128xf32>
    %48 = arith.addf %47, %44 : vector<16x128xf32>
    %49 = arith.mulf %46, %48 : vector<16x128xf32>
    %c0_22 = arith.constant 0 : index
    %c0_23 = arith.constant 0 : index
    %50 = vector.load %arg15[%c0_22, %c0_23] : memref<16x64xf32, #tpu.memory_space<vmem>>, vector<16x64xf32>
    %c0_24 = arith.constant 0 : index
    %c0_25 = arith.constant 0 : index
    %51 = vector.load %arg10[%c0_24, %c0_25] : memref<128x64xf32, #tpu.memory_space<vmem>>, vector<128x64xf32>
    %cst_26 = arith.constant dense<0.000000e+00> : vector<16x64xf32>
    %52 = tpu.matmul %49, %51, %cst_26 {dimension_numbers = #tpu.dot_dimension_numbers<[1], [0], [0], [1], [0, 0, 1, 1], [], []>} : vector<16x128xf32>, vector<128x64xf32>, vector<16x64xf32> -> vector<16x64xf32>
    %53 = arith.addf %50, %52 : vector<16x64xf32>
    %c0_27 = arith.constant 0 : index
    %c0_28 = arith.constant 0 : index
    %54 = vector.load %arg15[%c0_27, %c0_28] : memref<16x64xf32, #tpu.memory_space<vmem>>, vector<16x64xf32>
    tpu.vector_store %arg15[%c0_27, %c0_28], %53 {strides = array<i32>} : memref<16x64xf32, #tpu.memory_space<vmem>>, vector<16x64xf32>,
    %c1_i32 = arith.constant 1 : i32
    %55 = arith.cmpi eq, %arg1, %c1_i32 : i32
    %56 = arith.extui %55 : i1 to i32
    %c0_i32_29 = arith.constant 0 : i32
    %57 = arith.cmpi ne, %56, %c0_i32_29 : i32
    scf.if %57 {
      %c0_30 = arith.constant 0 : index
      %c0_31 = arith.constant 0 : index
      %58 = vector.load %arg13[%c0_30, %c0_31] : memref<16x64xf32, #tpu.memory_space<vmem>>, vector<16x64xf32>
      %c0_32 = arith.constant 0 : index
      %c0_33 = arith.constant 0 : index
      %59 = vector.load %arg15[%c0_32, %c0_33] : memref<16x64xf32, #tpu.memory_space<vmem>>, vector<16x64xf32>
      %60 = arith.addf %58, %59 : vector<16x64xf32>
      %c0_34 = arith.constant 0 : index
      %c0_35 = arith.constant 0 : index
      %61 = vector.load %arg11[%c0_34, %c0_35] : memref<1x64xf32, #tpu.memory_space<vmem>>, vector<1x64xf32>
      %62 = vector.broadcast %61 : vector<1x64xf32> to vector<16x64xf32>
      %63 = arith.addf %60, %62 : vector<16x64xf32>
      %c0_36 = arith.constant 0 : index
      %c0_37 = arith.constant 0 : index
      %64 = vector.load %arg12[%c0_36, %c0_37] : memref<16x64xf32, #tpu.memory_space<vmem>>, vector<16x64xf32>
      tpu.vector_store %arg12[%c0_36, %c0_37], %63 {strides = array<i32>} : memref<16x64xf32, #tpu.memory_space<vmem>>, vector<16x64xf32>,
    } else {
    }
    return
  }
  func.func @transform_0(%arg0: i32, %arg1: i32) -> (i32, i32) {
    %c0_i32 = arith.constant 0 : i32
    %c0_i32_0 = arith.constant 0 : i32
    return %arg0, %c0_i32 : i32, i32
  }
  func.func @transform_1(%arg0: i32, %arg1: i32) -> (i32, i32) {
    %c0_i32 = arith.constant 0 : i32
    %c0_i32_0 = arith.constant 0 : i32
    return %arg0, %c0_i32 : i32, i32
  }
  func.func @transform_2(%arg0: i32, %arg1: i32) -> (i32, i32) {
    %c0_i32 = arith.constant 0 : i32
    %c0_i32_0 = arith.constant 0 : i32
    %c0_i32_1 = arith.constant 0 : i32
    return %c0_i32, %c0_i32_0 : i32, i32
  }
  func.func @transform_3(%arg0: i32, %arg1: i32) -> (i32, i32) {
    %c0_i32 = arith.constant 0 : i32
    %c0_i32_0 = arith.constant 0 : i32
    %c0_i32_1 = arith.constant 0 : i32
    return %c0_i32, %c0_i32_0 : i32, i32
  }
  func.func @transform_4(%arg0: i32, %arg1: i32) -> (i32, i32) {
    %c0_i32 = arith.constant 0 : i32
    %c0_i32_0 = arith.constant 0 : i32
    %c0_i32_1 = arith.constant 0 : i32
    return %c0_i32, %c0_i32_0 : i32, i32
  }
  func.func @transform_5(%arg0: i32, %arg1: i32) -> (i32, i32) {
    %c0_i32 = arith.constant 0 : i32
    %c0_i32_0 = arith.constant 0 : i32
    %c0_i32_1 = arith.constant 0 : i32
    return %c0_i32, %c0_i32_0 : i32, i32
  }
  func.func @transform_6(%arg0: i32, %arg1: i32) -> (i32, i32) {
    %c0_i32 = arith.constant 0 : i32
    %c0_i32_0 = arith.constant 0 : i32
    return %c0_i32, %arg1 : i32, i32
  }
  func.func @transform_7(%arg0: i32, %arg1: i32) -> (i32, i32) {
    %c0_i32 = arith.constant 0 : i32
    %c0_i32_0 = arith.constant 0 : i32
    return %c0_i32, %arg1 : i32, i32
  }
  func.func @transform_8(%arg0: i32, %arg1: i32) -> (i32, i32) {
    %c0_i32 = arith.constant 0 : i32
    %c0_i32_0 = arith.constant 0 : i32
    return %arg1, %c0_i32 : i32, i32
  }
  func.func @transform_9(%arg0: i32, %arg1: i32) -> (i32, i32) {
    %c0_i32 = arith.constant 0 : i32
    %c0_i32_0 = arith.constant 0 : i32
    %c0_i32_1 = arith.constant 0 : i32
    return %c0_i32, %c0_i32_0 : i32, i32
  }
  func.func @transform_10(%arg0: i32, %arg1: i32) -> (i32, i32) {
    %c0_i32 = arith.constant 0 : i32
    %c0_i32_0 = arith.constant 0 : i32
    return %arg0, %c0_i32 : i32, i32
  }
}

</mosaic_0001>

<bundles_post_ra>
// kernel: transformer_encoder_layer.3
= control target key start
LH: loop header
LB: loop body
LE: loop exit
PB: predicated region body
PF: predicated region fallthrough
CT: control target
= control target key end

     0   :  { %s992_s27 = smov 0   ;;  %s1125_s0 = inlined_call_operand.vmem [shape: f32[32,64], index: 0, kind: input, shape index: {}]   ;;  %s1126_s1 = inlined_call_operand.vmem [shape: f32[1,64], index: 1, kind: input, shape index: {}]   ;;  %s1127_s2 = inlined_call_operand.vmem [shape: f32[1,64], index: 2, kind: input, shape index: {}]   ;;  %s1128_s3 = inlined_call_operand.vmem [shape: f32[64,64], index: 3, kind: input, shape index: {}]   ;;  %s1129_s4 = inlined_call_operand.vmem [shape: f32[64,64], index: 4, kind: input, shape index: {}]   ;;  %s1130_s5 = inlined_call_operand.vmem [shape: f32[64,64], index: 5, kind: input, shape index: {}]   ;;  %s1131_s6 = inlined_call_operand.vmem [shape: f32[32,64], index: 6, kind: output, shape index: {0}]   ;;  %s1132_s7 = inlined_call_operand.vmem [shape: f32[32,64], index: 7, kind: output, shape index: {1}]   ;;  %s1133_s8 = inlined_call_operand.vmem [shape: f32[32,64], index: 8, kind: output, shape index: {2}]  }
   0x1 LB: > { %s769_s28 = sadd.s32 4294967295, %s945_s27   ;;  %p773_p0 = scmp.ge.s32.totalorder %s945_s27, 1  ;;  %s945_s27 = sphi %s992_s27, %s19_s27  }
   0x2   : > { %p268_p1 = scmp.lt.s32.totalorder %s945_s27, 3 }
   0x4   : > { %p269_p2 = pnand %p773_p0, %p268_p1 }
   0x5   : > { %s774_s29 = sshll.u32 (!%p269_p2), %s769_s28, 1  ;;  %vm340_vm0 = vcmask (!%p269_p2), 523264   ;;  %v384_v14 = vld [vmem:[%s1128_s3] sm:$0xff] (!%p269_p2)  ;;  %v385_v15 = vld [vmem:[%s1128_s3 + $0x8] sm:$0xff] (!%p269_p2)  ;;  %v386_v20 = vld [vmem:[%s1128_s3 + $0x10] sm:$0xff] (!%p269_p2) }
   0x6   : > { %272 = sbr.rel (%p269_p2) target bundleno = 564 (0x234), region = 44  ;;  %p313_p3 = scmp.lt.s32.totalorder (!%p269_p2), %s774_s29, 3  ;;  %v879_v16 = vpack.c.bf16 (!%p269_p2), %v385_v15, %v384_v14  ;;  %v475_v17 = vld [vmem:[%s1129_s4] sm:$0xff] (!%p269_p2)  ;;  %v476_v18 = vld [vmem:[%s1129_s4 + $0x8] sm:$0xff] (!%p269_p2)  ;;  %v387_v21 = vld [vmem:[%s1128_s3 + $0x18] sm:$0xff] (!%p269_p2) }
   0x7   : > { %v895_v19 = vpack.c.bf16 (!%p269_p2), %v476_v18, %v475_v17  ;;  %v477_v22 = vld [vmem:[%s1129_s4 + $0x10] sm:$0xff] (!%p269_p2)  ;;  %v883_v23 = vpack.c.bf16 (!%p269_p2), %v387_v21, %v386_v20  ;;  %v478_v24 = vld [vmem:[%s1129_s4 + $0x18] sm:$0xff] (!%p269_p2)  ;;  %v388_v25 = vld [vmem:[%s1128_s3 + $0x20] sm:$0xff] (!%p269_p2) }
   0x8   : > { %880 = vmatprep.subr.bf16.mxu0 (!%p269_p2), %v879_v16  ;;  %v389_v26 = vld [vmem:[%s1128_s3 + $0x28] sm:$0xff] (!%p269_p2)  ;;  %v899_v27 = vpack.c.bf16 (!%p269_p2), %v478_v24, %v477_v22  ;;  %v479_v29 = vld [vmem:[%s1129_s4 + $0x20] sm:$0xff] (!%p269_p2)  ;;  %v390_v32 = vld [vmem:[%s1128_s3 + $0x30] sm:$0xff] (!%p269_p2) }
   0x9   : > { %882 = vmatpush3.bf16.msra.mxu0 (!%p269_p2), %v879_v16  ;;  %896 = vmatprep.subr.bf16.mxu1 (!%p269_p2), %v895_v19  ;;  %v887_v28 = vpack.c.bf16 (!%p269_p2), %v389_v26, %v388_v25  ;;  %v480_v30 = vld [vmem:[%s1129_s4 + $0x28] sm:$0xff] (!%p269_p2)  ;;  %v391_v33 = vld [vmem:[%s1128_s3 + $0x38] sm:$0xff] (!%p269_p2)  ;;  %v481_v35 = vld [vmem:[%s1129_s4 + $0x30] sm:$0xff] (!%p269_p2) }
   0xa   : > { %898 = vmatpush3.bf16.msra.mxu1 (!%p269_p2), %v895_v19  ;;  %884 = vmatprep.subr.bf16.mxu0 (!%p269_p2), %v883_v23  ;;  %v903_v31 = vpack.c.bf16 (!%p269_p2), %v480_v30, %v479_v29  ;;  %v891_v34 = vpack.c.bf16 (!%p269_p2), %v391_v33, %v390_v32  ;;  %v482_v36 = vld [vmem:[%s1129_s4 + $0x38] sm:$0xff] (!%p269_p2)  ;;  %v560_v38 = vld [vmem:[%s1130_s5] sm:$0xff] (!%p269_p2)  ;;  %v561_v39 = vld [vmem:[%s1130_s5 + $0x8] sm:$0xff] (!%p269_p2) }
   0xb   : > { %900 = vmatprep.subr.bf16.mxu1 (!%p269_p2), %v899_v27  ;;  %v907_v37 = vpack.c.bf16 (!%p269_p2), %v482_v36, %v481_v35  ;;  %v911_v40 = vpack.c.bf16 (!%p269_p2), %v561_v39, %v560_v38  ;;  %v782_v48 = vld [vmem:[%s1126_s1] ss:$0 sm:$0xff] (!%p269_p2)  ;;  %v562_v55 = vld [vmem:[%s1130_s5 + $0x10] sm:$0xff] (!%p269_p2)  ;;  %v563_v56 = vld [vmem:[%s1130_s5 + $0x18] sm:$0xff] (!%p269_p2) }
   0xc   : > { %v783_v50 = vld [vmem:[%s1127_s2] ss:$0 sm:$0xff] (!%p269_p2)  ;;  %v915_v59 = vpack.c.bf16 (!%p269_p2), %v563_v56, %v562_v55  ;;  %v565_v61 = vld [vmem:[%s1130_s5 + $0x28] sm:$0xff] (!%p269_p2)  ;;  %v566_v63 = vld [vmem:[%s1130_s5 + $0x30] sm:$0xff] (!%p269_p2) }
   0xd   : > { %s1135_s29 = smov (!%p313_p3, %s774_s29), 3  ;;  %886 = vmatpush3.bf16.msra.mxu0 %v883_v23  ;;  %v564_v60 = vld [vmem:[%s1130_s5 + $0x20] sm:$0xff] }
   0xe   : > { %s1000_s30 = sshll.u32 %s1135_s29, 3  ;;  %902 = vmatpush3.bf16.msra.mxu1 %v899_v27  ;;  %888 = vmatprep.subr.bf16.mxu0 %v887_v28  ;;  %v919_v62 = vpack.c.bf16 %v565_v61, %v564_v60 }
   0xf   : > { %s316_s11 = scalar_lea.vmem %s1125_s0, %s1000_s30  ;;  %904 = vmatprep.subr.bf16.mxu1 %v903_v31  ;;  %s322_s26 = scalar_lea.vmem %s1131_s6, %s1000_s30 }
  0x10   : > { %v336_v0 = vld [vmem:[%s316_s11] sm:$0xff]  ;;  %v337_v1 = vld [vmem:[%s316_s11 + $0x8] sm:$0xff]  ;;  %s328_s9 = scalar_lea.vmem %s1132_s7, %s1000_s30  ;;  %s334_s12 = scalar_lea.vmem %s1133_s8, %s1000_s30 }
  0x11   : > { %v341_v2 = vsel %vm340_vm0, %v336_v0, 0.0  ;;  %v344_v3 = vsel %vm340_vm0, %v337_v1, 0.0  ;;  %890 = vmatpush3.bf16.msra.mxu0 %v887_v28 }
  0x12   : > { %342 = vadd.xlane.f32.xlu0 %v341_v2  ;;  %906 = vmatpush3.bf16.msra.mxu1 %v903_v31 }
  0x13   : > { %892 = vmatprep.subr.bf16.mxu0 %v891_v34  ;;  %908 = vmatprep.subr.bf16.mxu1 %v907_v37 }
  0x15   : > { %894 = vmatpush3.bf16.msra.mxu0 %v891_v34 }
  0x16   : > { %345 = vadd.xlane.f32.xlu0 %v344_v3  ;;  %910 = vmatpush3.bf16.msra.mxu1 %v907_v37 }
  0x17   : > { %912 = vmatprep.subr.bf16.mxu0 %v911_v40 }
  0x9f   : > { %v343_v4 = vpop.xlane.xlu0 %342 }
  0xa0   : > { %v348_v5 = vmul.f32 0.015625, %v343_v4 }
  0xa2   : > { %v1008_v6 = vsub.f32 %v336_v0, %v348_v5  ;;  %v567_v0 = vld [vmem:[%s1130_s5 + $0x38] sm:$0xff] }
  0xa3   : > { %v346_v7 = vpop.xlane.xlu0 %345 }
  0xa4   : > { %v349_v8 = vmul.f32 0.015625, %v346_v7  ;;  %v352_v9 = vmul.f32 %v1008_v6, %v1008_v6 }
  0xa6   : > { %v1012_v10 = vsub.f32 %v337_v1, %v349_v8  ;;  %v354_v11 = vsel %vm340_vm0, %v352_v9, 0.0  ;;  %v923_v1 = vpack.c.bf16 %v567_v0, %v566_v63 }
  0xa7   : > { %355 = vadd.xlane.f32.xlu1 %v354_v11 }
  0xa8   : > { %v353_v12 = vmul.f32 %v1012_v10, %v1012_v10 }
  0xaa   : > { %v357_v13 = vsel %vm340_vm0, %v353_v12, 0.0 }
  0xab   : > { %358 = vadd.xlane.f32.xlu1 %v357_v13 }
 0x134   : > { %v356_v41 = vpop.xlane.xlu1 %355 }
 0x135   : > { %v360_v42 = vmul.f32 0.015625, %v356_v41 }
 0x137   : > { %v362_v43 = vadd.f32 1e-05, %v360_v42 }
 0x138   : > { %v359_v44 = vpop.xlane.xlu1 %358 }
 0x139   : > { %935 = vrsqrt.f32 %v362_v43  ;;  %v361_v45 = vmul.f32 0.015625, %v359_v44 }
 0x13b   : > { %v363_v46 = vadd.f32 1e-05, %v361_v45 }
 0x13d   : > { %937 = vrsqrt.f32 %v363_v46 }
 0x143   : > { %v936_v47 = vpop.eup %935 }
 0x144   : > { %v366_v49 = vmul.f32 %v936_v47, %v1008_v6 }
 0x146   : > { %v374_v51 = vmul.f32 %v782_v48, %v366_v49 }
 0x147   : > { %v938_v52 = vpop.eup %937 }
 0x148   : > { %v367_v53 = vmul.f32 %v938_v52, %v1012_v10  ;;  %v382_v54 = vadd.f32 %v783_v50, %v374_v51 }
 0x14a   : > { %v375_v57 = vmul.f32 %v782_v48, %v367_v53  ;;  %838 = vmatprep.mubr.msk.f32.mxu0 %vm340_vm0, %v382_v54  ;;  %857 = vmatprep.mubr.msk.f32.mxu1 %vm340_vm0, %v382_v54 }
 0x14c   : > { %v383_v58 = vadd.f32 %v783_v50, %v375_v57 }
 0x14e   : > { %839 = vmatmul.mubr.msk.f32.vlgmr.msra.gmra.mrb[0].mxu0 %vm340_vm0, %v383_v58  ;;  %858 = vmatmul.mubr.msk.f32.vlgmr.msra.gmra.mrb[0].mxu1 %vm340_vm0, %v383_v58 }
 0x14f   : > { %914 = vmatpush3.bf16.msra.mxu0 %v911_v40  ;;  %876 = vmatprep.mubr.msk.f32.mxu0 %vm340_vm0, %v382_v54 }
 0x150   : > { %916 = vmatprep.subr.bf16.mxu0 %v915_v59 }
 0x153   : > { %918 = vmatpush3.bf16.msra.mxu0 %v915_v59 }
 0x154   : > { %920 = vmatprep.subr.bf16.mxu0 %v919_v62 }
 0x157   : > { %922 = vmatpush3.bf16.msra.mxu0 %v919_v62 }
 0x158   : > { %924 = vmatprep.subr.bf16.mxu0 %v923_v1 }
 0x15b   : > { %926 = vmatpush3.bf16.msra.mxu0 %v923_v1 }
 0x15e   : > { %877 = vmatmul.mubr.msk.f32.vlgmr.msra.gmra.mrb[2].mxu0 %vm340_vm0, %v383_v58 }
 0x221   : > { %v840_v2 = vpop.f32.mrb[0].mxu0  ;;  %v859_v3 = vpop.f32.mrb[0].mxu1 }
 0x222   : > { %v464_v4 = vpop.f32.mrb[1].mxu0  ;;  %v549_v5 = vpop.f32.mrb[1].mxu1  ;;  %474 = vst.msk [vmem:[%s322_s26 + $0x8] sm:$0xff] %vm340_vm0, %v840_v2  ;;  %559 = vst.msk [vmem:[%s328_s9 + $0x8] sm:$0xff] %vm340_vm0, %v859_v3 }
 0x223   : > { %473 = vst.msk [vmem:[%s322_s26] sm:$0xff] %vm340_vm0, %v464_v4  ;;  %558 = vst.msk [vmem:[%s328_s9] sm:$0xff] %vm340_vm0, %v549_v5 }
 0x231   : > { %v878_v6 = vpop.f32.mrb[2].mxu0 }
 0x232   : > { %v634_v7 = vpop.f32.mrb[3].mxu0  ;;  %644 = vst.msk [vmem:[%s334_s12 + $0x8] sm:$0xff] %vm340_vm0, %v878_v6 }
 0x233   : > { %643 = vst.msk [vmem:[%s334_s12] sm:$0xff] %vm340_vm0, %v634_v7 }
 0x234 PF: > { %s19_s27 = sadd.s32 1, %s945_s27  }
 0x235   : > { %p16_p4 = scmp.ge.s32.totalorder %s19_s27, 4  }
 0x237   :  { %18 = sbr.rel (!%p16_p4) target bundleno = 1 (0x1), region = 98 }

// kernel: transformer_encoder_layer.4
= control target key start
LH: loop header
LB: loop body
LE: loop exit
PB: predicated region body
PF: predicated region fallthrough
CT: control target
= control target key end

     0   :  { %10 = vsyncpa [#allocation3], 0  ;;  %s1861_s0 = inlined_call_operand.vmem [shape: f32[32,64], index: 0, kind: input, shape index: {}]   ;;  %s1862_s1 = inlined_call_operand.vmem [shape: f32[32,64], index: 1, kind: input, shape index: {}]   ;;  %s1863_s2 = inlined_call_operand.vmem [shape: f32[32,64], index: 2, kind: input, shape index: {}]   ;;  %s1864_s3 = inlined_call_operand.hbm [shape: f32[2,4,16,16], index: 3, kind: output, shape index: {0}]   ;;  %s1865_s4 = inlined_call_operand.vmem [shape: f32[32,64], index: 4, kind: output, shape index: {1}]  }
   0x1   :  { %12 = vsyncpa [#allocation3 + $0x1], 0  ;;  %s1619_s15 = smov 0   ;;  %s1621_s16 = smov 0  }
   0x2   :  { %s1623_s17 = smov 0   ;;  %s1625_s18 = smov 0  }
   0x3 LB: > { %s1640_s19 = sadd.s32 4294967295, %s1583_s18   ;;  %s1235_s20 = sadd.s32 4294967294, %s1583_s18   ;;  %s1583_s18 = sphi %s1625_s18, %s1873_s18   ;;  %s1579_s17 = sphi %s1623_s17, %s1872_s17   ;;  %s1575_s16 = sphi %s1621_s16, %s1871_s16   ;;  %s1571_s15 = sphi %s1619_s15, %s1870_s15  }
   0x4   : > { %s1644_s21 = sadd.s32 1, %s1583_s18   ;;  %s103_s22 = sadd.s32 1, %s1579_s17 }
   0x5   : > { %s100_s23 = ssub.s32 %s1583_s18, %s1644_s21  ;;  %p113_p0 = scmp.ne.s32.totalorder %s1579_s17, %s1575_s16 }
   0x6   : > { %p101_p1 = scmp.eq.s32.totalorder %s100_s23, 0  ;;  %p114_p2 = scmp.eq.s32.totalorder %s1640_s19, 1 }
   0x7   : > { %p119_p3 = scmp.ne.s32.totalorder %s1575_s16, %s1571_s15  ;;  %p120_p4 = scmp.eq.s32.totalorder %s1235_s20, 1 }
   0x8   : > { %s1655_s24 = scalar_select %p101_p1, %s1579_s17, %s103_s22  }
   0x9   : > { %p1657_p5 = por %p114_p2, %p113_p0  ;;  %p1661_p6 = por %p120_p4, %p119_p3 }
   0xa   : > { %p1238_p7 = scmp.ge.s32.totalorder %s1583_s18, 1  ;;  %p191_p8 = scmp.lt.s32.totalorder %s1583_s18, 3 }
   0xc   : > { %p192_p9 = pnand %p1238_p7, %p191_p8 }
   0xd   : > { %s1240_s27 = sshll.u32 (!%p192_p9), %s1640_s19, 1  ;;  %vm262_vm0 = vcmask (!%p192_p9), 130048   ;;  %s1585_s9 = smov (!%p192_p9), 112  }
   0xe   : > { %195 = sbr.rel (%p192_p9) target bundleno = 2518 (0x9d6), region = 32  ;;  %p233_p10 = scmp.lt.s32.totalorder (!%p192_p9), %s1240_s27, 3  ;;  %vm1676_vm1 = vmpackc.low (!%p192_p9), %vm262_vm0, %vm262_vm0 }
   0xf   : > { %s222_s13 = sand.u32 (!%p192_p9), 1, %s1575_s16   ;;  %s1586_s22 = smov (!%p192_p9), 96  }
  0x10   : > { %s1239_s14 = sshll.u32 (!%p192_p9), %s222_s13, 6  ;;  %s1587_s23 = smov (!%p192_p9), 80  }
  0x11   : > { %s1717_s20 = scalar_lea.vmem (!%p192_p9), [#allocation2], %s1239_s14  ;;  %s1589_s29 = smov (!%p192_p9), 32  }
  0x12   : > { %s1283_s30 = sshll.u32 (!%p192_p9), %s1640_s19, 10  ;;  %s1590_s19 = smov (!%p192_p9), [#allocation2]  }
  0x13   : > { %s1525_s11 = sshll.u32 (!%p192_p9), %s1590_s19, 4  ;;  %s1526_s11 = int_to_ptr.vmem [resolvable:$false] %s1525_s11 }
  0x15   : > { %s1875_s27 = smov (!%p233_p10, %s1240_s27), 3 }
  0x16   : > { %s1668_s28 = sshll.u32 %s1875_s27, 3  ;;  %s1588_s27 = smov 16  }
  0x17   : > { %s242_s5 = scalar_lea.vmem %s1862_s1, %s1668_s28  ;;  %s236_s8 = scalar_lea.vmem %s1861_s0, %s1668_s28 }
  0x18   : > { %v258_v1 = vld [vmem:[%s242_s5] sm:$0xff]  ;;  %v259_v2 = vld [vmem:[%s242_s5 + $0x8] sm:$0xff]  ;;  %s248_s12 = scalar_lea.vmem %s1863_s2, %s1668_s28  ;;  %s1120_s5 = sshll.u32 %s1717_s20, 4  ;;  %s1808_s5 = int_to_ptr.vmem [resolvable:$true] %s1120_s5 }
  0x19   : > { %v1684_v3 = vld [vmem:[%s236_s8] sm:$0xff]  ;;  %v1372_v4 = vpack.c.bf16 %v259_v2, %v258_v1  ;;  %v1692_v5 = vld [vmem:[%s236_s8 + $0x8] sm:$0xff]  ;;  %v1700_v10 = vpack.i.bf16 %v259_v2, %v258_v1  ;;  %s1806_s8 = scalar_lea.hbm %s1864_s3, %s1283_s30  ;;  %s1521_s10 = scalar_lea.vmem %s1808_s5, 1024 }
  0x1a   : > { %1320 = vmatprep.mubr.msk.f32.mxu0 %vm262_vm0, %v1684_v3  ;;  %455 = vrot.lane.b32.xlu1 %v1684_v3, %s1585_s9  ;;  %v260_v22 = vld [vmem:[%s248_s12] sm:$0xff]  ;;  %v261_v23 = vld [vmem:[%s248_s12 + $0x8] sm:$0xff]  ;;  %p1522_p11 = scmp.ne.s32.totalorder %s1808_s5, %s1521_s10  ;;  %s1527_s12 = scalar_lea.vmem %s1526_s11, 2048 }
  0x1b   : > { %1374 = vmatprep.subr.msk.bf16.mxu0 %vm1676_vm1, %v1372_v4  ;;  %v1378_v26 = vpack.c.bf16 %v261_v23, %v260_v22  ;;  %v1735_v42 = vpack.i.bf16 %v261_v23, %v260_v22  ;;  %p1528_p0 = scmp.lt.s32.totalorder %s1808_s5, %s1526_s11  ;;  %p1529_p1 = scmp.lt.s32.totalorder %s1527_s12, %s1521_s10 }
  0x1c   : > { %1377 = vmatpush3.bf16.xpose.msk.msra.mxu0 %vm1676_vm1, %v1372_v4  ;;  %p1523_p12 = pnand %p1522_p11, %p1657_p5 }
  0x1d   : > { %1379 = vmatprep.subr.bf16.mxu1 %v1378_v26  ;;  %p1530_p2 = por %p1529_p1, %p1528_p0 }
  0x1e   : > { %1381 = vmatpush3.bf16.msra.mxu1 %v1378_v26  ;;  %p1524_p13 = pneg %p1523_p12 }
  0x20   : > { %p1531_p3 = pnand %p1530_p2, %p1524_p13 }
  0x23   : > { %1321 = vmatmul.mubr.msk.f32.vlgmr.msra.gmra.mrb[0].mxu0 %vm262_vm0, %v1692_v5 }
  0x8c   : > { %v456_v28 = vpop.permute.xlu1 %455 }
  0xf6   : > { %v1322_v6 = vpop.f32.mrb[0].mxu0 }
  0xf7   : > { %v341_v7 = vpop.f32.mrb[1].mxu0  ;;  %v353_v9 = vsel %vm262_vm0, %v1322_v6, -inf }
  0xf8   : > { %v350_v8 = vsel %vm262_vm0, %v341_v7, -inf }
  0xf9   : > { %351 = vmax.xlane.f32.xlu0 %v350_v8 }
  0xfd   : > { %354 = vmax.xlane.f32.xlu0 %v353_v9 }
 0x113   : > { %1460 = vrot.lane.b32.xlu0 %v1700_v10, %s1585_s9 }
 0x186   : > { %v352_v11 = vpop.xlane.xlu0 %351 }
 0x187   : > { %v356_v12 = vsub.f32 %v341_v7, %v352_v11 }
 0x189   : > { %v358_v15 = vmul.f32 1.442695, %v356_v12 }
 0x18a   : > { %v355_v13 = vpop.xlane.xlu0 %354 }
 0x18b   : > { %v357_v14 = vsub.f32 %v1322_v6, %v355_v13 }
 0x18d   : > { %v360_v16 = vmul.f32 1.442695, %v357_v14 }
 0x18e   : > { %v1461_v21 = vpop.permute.xlu0 %1460 }
 0x18f   : > { %1489 = vpow2.f32 %v360_v16  ;;  %v1463_v24 = vunpack.i.h.bf16 %v1461_v21  ;;  %v1462_v25 = vunpack.i.l.bf16 %v1461_v21 }
 0x190   : > { %1491 = vpow2.f32 %v358_v15 }
 0x191   : > { %v1382_v27 = vpack.c.bf16 %v1463_v24, %v1462_v25 }
 0x193   : > { %1384 = vmatprep.subr.msk.bf16.mxu1 %vm1676_vm1, %v1382_v27 }
 0x199   : > { %v1490_v17 = vpop.eup %1489 }
 0x19a   : > { %v365_v18 = vsel %vm262_vm0, %v1490_v17, 0.0  ;;  %v1492_v19 = vpop.eup %1491 }
 0x19b   : > { %366 = vadd.xlane.f32.xlu1 %v365_v18  ;;  %v362_v20 = vsel %vm262_vm0, %v1492_v19, 0.0 }
 0x19f   : > { %363 = vadd.xlane.f32.xlu1 %v362_v20 }
 0x1b0   : > { %457 = vrot.lane.b32.xlu1 %v1692_v5, %s1585_s9 }
 0x228   : > { %v367_v29 = vpop.xlane.xlu1 %366 }
 0x229   : > { %1493 = vrcp.f32 %v367_v29 }
 0x22c   : > { %v364_v30 = vpop.xlane.xlu1 %363 }
 0x22d   : > { %1495 = vrcp.f32 %v364_v30 }
 0x230   : > { %v458_v35 = vpop.permute.xlu1 %457 }
 0x233   : > { %v1494_v31 = vpop.eup %1493 }
 0x234   : > { %v371_v32 = vmul.f32 %v1494_v31, %v1490_v17 }
 0x236   : > { %373 = vst.msk [vmem:[%s1717_s20 + $0x8] sm:$0xff] %vm262_vm0, %v371_v32 }
 0x237   : > { %v1496_v33 = vpop.eup %1495 }
 0x238   : > { %v370_v34 = vmul.f32 %v1496_v33, %v1492_v19 }
 0x23a   : > { %372 = vst.msk [vmem:[%s1717_s20] sm:$0xff] %vm262_vm0, %v370_v34  ;;  %1327 = vmatprep.mubr.msk.f32.mxu1 %vm262_vm0, %v370_v34 }
 0x23b   : > { %1328 = vmatmul.mubr.msk.f32.vlgmr.msra.gmra.mrb[0].mxu1 %vm262_vm0, %v371_v32 }
 0x23c   : > { %1387 = vmatpush3.bf16.xpose.msk.msra.mxu1 %vm1676_vm1, %v1382_v27  ;;  %1334 = vmatprep.mubr.msk.f32.mxu1 %vm262_vm0, %v456_v28 }
 0x243   : > { %1335 = vmatmul.mubr.msk.f32.vlgmr.msra.gmra.mrb[2].mxu1 %vm262_vm0, %v458_v35 }
 0x30e   : > { %v1729_v36 = vpop.f32.mrb[0].mxu1 }
 0x30f   : > { %v1731_v37 = vpop.f32.mrb[1].mxu1 }
 0x316   : > { %v1336_v38 = vpop.f32.mrb[2].mxu1 }
 0x317   : > { %v537_v39 = vpop.f32.mrb[3].mxu1  ;;  %v549_v40 = vsel %vm262_vm0, %v1336_v38, -inf }
 0x318   : > { %550 = vmax.xlane.f32.xlu0 %v549_v40  ;;  %v546_v41 = vsel %vm262_vm0, %v537_v39, -inf }
 0x319   : > { %547 = vmax.xlane.f32.xlu1 %v546_v41 }
 0x32a   : > { %1465 = vrot.lane.b32.xlu1 %v1735_v42, %s1585_s9  ;;  %s1812_s9 = scalar_lea.sflag [#allocation3], %s222_s13 }
 0x32e   : > { %660 = vrot.lane.b32.xlu1 %v1684_v3, %s1586_s22 }
 0x332   : > { %662 = vrot.lane.b32.xlu1 %v1692_v5, %s1586_s22 }
 0x3a5   : > { %v551_v43 = vpop.xlane.xlu0 %550 }
 0x3a6   : > { %v553_v44 = vsub.f32 %v1336_v38, %v551_v43  ;;  %v548_v45 = vpop.xlane.xlu1 %547 }
 0x3a7   : > { %v552_v46 = vsub.f32 %v537_v39, %v548_v45 }
 0x3a8   : > { %v556_v47 = vmul.f32 1.442695, %v553_v44 }
 0x3a9   : > { %v554_v48 = vmul.f32 1.442695, %v552_v46 }
 0x3aa   : > { %1497 = vpow2.f32 %v556_v47  ;;  %v1466_v53 = vpop.permute.xlu1 %1465 }
 0x3ab   : > { %1499 = vpow2.f32 %v554_v48  ;;  %v1468_v54 = vunpack.i.h.bf16 %v1466_v53  ;;  %v1467_v55 = vunpack.i.l.bf16 %v1466_v53 }
 0x3ad   : > { %v1388_v56 = vpack.c.bf16 %v1468_v54, %v1467_v55 }
 0x3ae   : > { %v661_v6 = vpop.permute.xlu1 %660 }
 0x3af   : > { %1389 = vmatprep.subr.bf16.mxu0 %v1388_v56 }
 0x3b0   : > { %1391 = vmatpush3.bf16.msra.mxu0 %v1388_v56 }
 0x3b2   : > { %v663_v7 = vpop.permute.xlu1 %662 }
 0x3b4   : > { %v1498_v49 = vpop.eup %1497 }
 0x3b5   : > { %v561_v50 = vsel %vm262_vm0, %v1498_v49, 0.0  ;;  %v1500_v51 = vpop.eup %1499 }
 0x3b6   : > { %562 = vadd.xlane.f32.xlu0 %v561_v50  ;;  %v558_v52 = vsel %vm262_vm0, %v1500_v51, 0.0 }
 0x3ba   : > { %559 = vadd.xlane.f32.xlu0 %v558_v52 }
 0x3d0   : > { %1470 = vrot.lane.b32.xlu0 %v1700_v10, %s1586_s22 }
 0x443   : > { %v563_v57 = vpop.xlane.xlu0 %562 }
 0x444   : > { %1501 = vrcp.f32 %v563_v57 }
 0x447   : > { %v560_v58 = vpop.xlane.xlu0 %559 }
 0x448   : > { %1503 = vrcp.f32 %v560_v58 }
 0x44b   : > { %v1471_v59 = vpop.permute.xlu0 %1470 }
 0x44c   : > { %v1473_v60 = vunpack.i.h.bf16 %v1471_v59  ;;  %v1472_v61 = vunpack.i.l.bf16 %v1471_v59 }
 0x44e   : > { %v1502_v62 = vpop.eup %1501  ;;  %v1392_v63 = vpack.c.bf16 %v1473_v60, %v1472_v61 }
 0x44f   : > { %v567_v1 = vmul.f32 %v1502_v62, %v1498_v49 }
 0x450   : > { %1394 = vmatprep.subr.msk.bf16.mxu0 %vm1676_vm1, %v1392_v63 }
 0x451   : > { %1259 = vst.msk [vmem:[%s1717_s20 + $0x18] sm:$0xff] %vm262_vm0, %v567_v1 }
 0x452   : > { %v1504_v2 = vpop.eup %1503 }
 0x453   : > { %v566_v4 = vmul.f32 %v1504_v2, %v1500_v51 }
 0x455   : > { %1258 = vst.msk [vmem:[%s1717_s20 + $0x10] sm:$0xff] %vm262_vm0, %v566_v4  ;;  %1341 = vmatprep.mubr.msk.f32.mxu0 %vm262_vm0, %v566_v4 }
 0x456   : > { %1342 = vmatmul.mubr.msk.f32.vlgmr.msra.gmra.mrb[2].mxu0 %vm262_vm0, %v567_v1 }
 0x457   : > { %1397 = vmatpush3.bf16.xpose.msk.msra.mxu0 %vm1676_vm1, %v1392_v63  ;;  %1348 = vmatprep.mubr.msk.f32.mxu0 %vm262_vm0, %v661_v6 }
 0x45e   : > { %1349 = vmatmul.mubr.msk.f32.vlgmr.msra.gmra.mrb[4].mxu0 %vm262_vm0, %v663_v7 }
 0x529   : > { %v1759_v8 = vpop.f32.mrb[2].mxu0 }
 0x52a   : > { %v1761_v9 = vpop.f32.mrb[3].mxu0 }
 0x531   : > { %v1350_v11 = vpop.f32.mrb[4].mxu0 }
 0x532   : > { %v742_v12 = vpop.f32.mrb[5].mxu0  ;;  %v754_v13 = vsel %vm262_vm0, %v1350_v11, -inf }
 0x533   : > { %755 = vmax.xlane.f32.xlu0 %v754_v13  ;;  %v751_v14 = vsel %vm262_vm0, %v742_v12, -inf }
 0x534   : > { %752 = vmax.xlane.f32.xlu1 %v751_v14 }
 0x545   : > { %1475 = vrot.lane.b32.xlu1 %v1735_v42, %s1586_s22 }
 0x549   : > { %863 = vrot.lane.b32.xlu1 %v1684_v3, %s1587_s23 }
 0x54d   : > { %865 = vrot.lane.b32.xlu1 %v1692_v5, %s1587_s23 }
 0x5c0   : > { %v756_v15 = vpop.xlane.xlu0 %755 }
 0x5c1   : > { %v758_v16 = vsub.f32 %v1350_v11, %v756_v15  ;;  %v753_v17 = vpop.xlane.xlu1 %752 }
 0x5c2   : > { %v757_v18 = vsub.f32 %v742_v12, %v753_v17 }
 0x5c3   : > { %v761_v19 = vmul.f32 1.442695, %v758_v16 }
 0x5c4   : > { %v759_v20 = vmul.f32 1.442695, %v757_v18 }
 0x5c5   : > { %1505 = vpow2.f32 %v761_v19  ;;  %v1476_v3 = vpop.permute.xlu1 %1475 }
 0x5c6   : > { %1507 = vpow2.f32 %v759_v20  ;;  %v1478_v25 = vunpack.i.h.bf16 %v1476_v3  ;;  %v1477_v26 = vunpack.i.l.bf16 %v1476_v3 }
 0x5c8   : > { %v1398_v5 = vpack.c.bf16 %v1478_v25, %v1477_v26 }
 0x5c9   : > { %v864_v39 = vpop.permute.xlu1 %863 }
 0x5ca   : > { %1399 = vmatprep.subr.bf16.mxu1 %v1398_v5 }
 0x5cb   : > { %1401 = vmatpush3.bf16.msra.mxu1 %v1398_v5 }
 0x5cf   : > { %v1506_v21 = vpop.eup %1505 }
 0x5d0   : > { %v766_v22 = vsel %vm262_vm0, %v1506_v21, 0.0  ;;  %v1508_v23 = vpop.eup %1507 }
 0x5d1   : > { %767 = vadd.xlane.f32.xlu0 %v766_v22  ;;  %v763_v24 = vsel %vm262_vm0, %v1508_v23, 0.0 }
 0x5d5   : > { %764 = vadd.xlane.f32.xlu0 %v763_v24 }
 0x5eb   : > { %1480 = vrot.lane.b32.xlu0 %v1700_v10, %s1587_s23  ;;  %v866_v10 = vpop.permute.xlu1 %865 }
 0x65e   : > { %v768_v27 = vpop.xlane.xlu0 %767 }
 0x65f   : > { %1509 = vrcp.f32 %v768_v27 }
 0x662   : > { %v765_v28 = vpop.xlane.xlu0 %764 }
 0x663   : > { %1511 = vrcp.f32 %v765_v28 }
 0x666   : > { %v1481_v29 = vpop.permute.xlu0 %1480 }
 0x667   : > { %v1483_v30 = vunpack.i.h.bf16 %v1481_v29  ;;  %v1482_v31 = vunpack.i.l.bf16 %v1481_v29 }
 0x669   : > { %v1510_v32 = vpop.eup %1509  ;;  %v1402_v33 = vpack.c.bf16 %v1483_v30, %v1482_v31 }
 0x66a   : > { %v772_v34 = vmul.f32 %v1510_v32, %v1506_v21 }
 0x66b   : > { %1404 = vmatprep.subr.msk.bf16.mxu1 %vm1676_vm1, %v1402_v33 }
 0x66c   : > { %1267 = vst.msk [vmem:[%s1717_s20 + $0x28] sm:$0xff] %vm262_vm0, %v772_v34 }
 0x66d   : > { %v1512_v35 = vpop.eup %1511 }
 0x66e   : > { %v771_v38 = vmul.f32 %v1512_v35, %v1508_v23 }
 0x670   : > { %1266 = vst.msk [vmem:[%s1717_s20 + $0x20] sm:$0xff] %vm262_vm0, %v771_v38  ;;  %1355 = vmatprep.mubr.msk.f32.mxu1 %vm262_vm0, %v771_v38 }
 0x671   : > { %1356 = vmatmul.mubr.msk.f32.vlgmr.msra.gmra.mrb[4].mxu1 %vm262_vm0, %v772_v34 }
 0x672   : > { %1407 = vmatpush3.bf16.xpose.msk.msra.mxu1 %vm1676_vm1, %v1402_v33  ;;  %1362 = vmatprep.mubr.msk.f32.mxu1 %vm262_vm0, %v864_v39 }
 0x679   : > { %1363 = vmatmul.mubr.msk.f32.vlgmr.msra.gmra.mrb[6].mxu1 %vm262_vm0, %v866_v10 }
 0x744   : > { %v1357_v40 = vpop.f32.mrb[4].mxu1 }
 0x745   : > { %v854_v41 = vpop.f32.mrb[5].mxu1 }
 0x74c   : > { %v1364_v43 = vpop.f32.mrb[6].mxu1 }
 0x74d   : > { %v945_v44 = vpop.f32.mrb[7].mxu1  ;;  %v957_v45 = vsel %vm262_vm0, %v1364_v43, -inf }
 0x74e   : > { %958 = vmax.xlane.f32.xlu0 %v957_v45  ;;  %v954_v46 = vsel %vm262_vm0, %v945_v44, -inf }
 0x74f   : > { %955 = vmax.xlane.f32.xlu1 %v954_v46 }
 0x760   : > { %1485 = vrot.lane.b32.xlu1 %v1735_v42, %s1587_s23 }
 0x764   : > { %1070 = vrot.lane.b32.xlu1 %v1759_v8, %s1588_s27 }
 0x768   : > { %1076 = vrot.lane.b32.xlu1 %v854_v41, %s1589_s29 }
 0x76c   : > { %1078 = vrot.lane.b32.xlu1 %v1357_v40, %s1589_s29 }
 0x7db   : > { %v959_v0 = vpop.xlane.xlu0 %958 }
 0x7dc   : > { %v961_v47 = vsub.f32 %v1364_v43, %v959_v0  ;;  %v956_v48 = vpop.xlane.xlu1 %955 }
 0x7dd   : > { %v960_v49 = vsub.f32 %v945_v44, %v956_v48 }
 0x7de   : > { %v964_v50 = vmul.f32 1.442695, %v961_v47 }
 0x7df   : > { %v962_v51 = vmul.f32 1.442695, %v960_v49 }
 0x7e0   : > { %v1486_v52 = vpop.permute.xlu1 %1485 }
 0x7e1   : > { %1513 = vpow2.f32 %v962_v51  ;;  %v1488_v53 = vunpack.i.h.bf16 %v1486_v52  ;;  %v1487_v54 = vunpack.i.l.bf16 %v1486_v52 }
 0x7e2   : > { %1515 = vpow2.f32 %v964_v50 }
 0x7e3   : > { %v1408_v55 = vpack.c.bf16 %v1488_v53, %v1487_v54 }
 0x7e5   : > { %1409 = vmatprep.subr.bf16.mxu0 %v1408_v55 }
 0x7e6   : > { %1411 = vmatpush3.bf16.msra.mxu0 %v1408_v55 }
 0x7eb   : > { %v1514_v42 = vpop.eup %1513 }
 0x7ec   : > { %v966_v56 = vsel %vm262_vm0, %v1514_v42, 0.0  ;;  %v1516_v57 = vpop.eup %1515 }
 0x7ed   : > { %967 = vadd.xlane.f32.xlu0 %v966_v56  ;;  %v969_v58 = vsel %vm262_vm0, %v1516_v57, 0.0 }
 0x7f1   : > { %970 = vadd.xlane.f32.xlu0 %v969_v58 }
 0x807   : > { %1068 = vrot.lane.b32.xlu0 %v1761_v9, %s1588_s27 }
 0x87a   : > { %v968_v59 = vpop.xlane.xlu0 %967 }
 0x87b   : > { %1517 = vrcp.f32 %v968_v59 }
 0x87e   : > { %v971_v60 = vpop.xlane.xlu0 %970 }
 0x87f   : > { %1519 = vrcp.f32 %v971_v60 }
 0x885   : > { %v1518_v61 = vpop.eup %1517 }
 0x886   : > { %v974_v62 = vmul.f32 %v1518_v61, %v1514_v42 }
 0x888   : > { %1274 = vst.msk [vmem:[%s1717_s20 + $0x30] sm:$0xff] %vm262_vm0, %v974_v62  ;;  %1369 = vmatprep.mubr.msk.f32.mxu0 %vm262_vm0, %v974_v62 }
 0x889   : > { %v1520_v63 = vpop.eup %1519 }
 0x88a   : > { %v975_v1 = vmul.f32 %v1520_v63, %v1516_v57 }
 0x88c   : > { %1275 = vst.msk [vmem:[%s1717_s20 + $0x38] sm:$0xff] %vm262_vm0, %v975_v1  ;;  %1370 = vmatmul.mubr.msk.f32.vlgmr.msra.gmra.mrb[6].mxu0 %vm262_vm0, %v975_v1 }
 0x88d   : > { %1534 = shalt.err (!%p1531_p3)
}
 0x88e   : > { %s1535_s13 = scalar_lea.hbm %s1806_s8, 1024  ;;  %s1539_s22 = scalar_lea.hbm %s1864_s3, 2048 }
 0x88f   : > { %p1536_p4 = scmp.ne.s32.totalorder %s1806_s8, %s1535_s13  ;;  %p1540_p9 = scmp.lt.u32.totalorder %s1806_s8, %s1864_s3 }
 0x890   : > { %p1541_p10 = scmp.lt.u32.totalorder %s1539_s22, %s1535_s13  ;;  %p1543_p12 = scmp.lt.u32.totalorder %s1535_s13, %s1806_s8 }
 0x891   : > { %p1537_p7 = pnand %p1536_p4, %p1657_p5 }
 0x892   : > { %p1542_p11 = por %p1541_p10, %p1540_p9 }
 0x893   : > { %p1538_p8 = pneg %p1537_p7 }
 0x894   : > { %p1544_p13 = por %p1543_p12, %p1542_p11 }
 0x896   : > { %p1545_p0 = pnand %p1544_p13, %p1538_p8 }
 0x898   : > { %1548 = shalt.err (!%p1545_p0)
}
 0x899   : > { %s1591_s29 = smov 128   ;;  %s1592_s30 = smov 8   ;;  %v1071_v6 = vpop.permute.xlu1 %1070  ;;  %v1069_v8 = vpop.permute.xlu0 %1068  ;;  %vm1092_vm2 = vcmask 261120   ;;  %vm1095_vm3 = vcmask 392192   ;;  %vm1098_vm4 = vcmask 523264  }
 0x89a   : > { %1412 = dma.vmem_to_hbm [thread:$0]  (%p1657_p5), %s1808_s5, 1024, %s1806_s8, %s1812_s9, %s1591_s29, %s1591_s29, %s1592_s30   ;;  %v1090_v11 = vsel %vm262_vm0, %v1731_v37, %v1069_v8  ;;  %v1091_v13 = vsel %vm262_vm0, %v1729_v36, %v1071_v6 }
 0x89b   : > { %s1593_s6 = smov 48   ;;  %s254_s25 = scalar_lea.vmem %s1865_s4, %s1668_s28 }
 0x89d   : > { %v1077_v7 = vpop.permute.xlu1 %1076 }
 0x89e   : > { %v1093_v14 = vsel %vm1092_vm2, %v1090_v11, %v1077_v7 }
 0x8a1   : > { %v1079_v9 = vpop.permute.xlu1 %1078 }
 0x8a2   : > { %v1094_v16 = vsel %vm1092_vm2, %v1091_v13, %v1079_v9 }
 0x95f   : > { %v1371_v2 = vpop.f32.mrb[6].mxu0 }
 0x960   : > { %1086 = vrot.lane.b32.xlu1 %v1371_v2, %s1593_s6  ;;  %v1057_v4 = vpop.f32.mrb[7].mxu0 }
 0x961   : > { %1084 = vrot.lane.b32.xlu0 %v1057_v4, %s1593_s6 }
 0x9d2   : > { %v1087_v12 = vpop.permute.xlu1 %1086 }
 0x9d3   : > { %v1085_v15 = vpop.permute.xlu0 %1084  ;;  %v1097_v18 = vsel %vm1095_vm3, %v1094_v16, %v1087_v12 }
 0x9d4   : > { %v1096_v17 = vsel %vm1095_vm3, %v1093_v14, %v1085_v15  ;;  %1100 = vst.msk [vmem:[%s254_s25 + $0x8] sm:$0xff] %vm1098_vm4, %v1097_v18 }
 0x9d5   : > { %1099 = vst.msk [vmem:[%s254_s25] sm:$0xff] %vm1098_vm4, %v1096_v17 }
 0x9d6 PF: > { %p1418_p5 = scmp.ge.s32.totalorder %s1583_s18, 2  ;;  %s1139_s5 = sand.u32 1, %s1571_s15  }
 0x9d7   : > { %s1140_s28 = scalar_lea.sflag [#allocation3], %s1139_s5 }
 0x9d8   : > { %p1415_p1 = pnand %p1418_p5, %p1661_p6 }
 0x9da   : > { %1566 = dma.done.wait (!%p1415_p1), %s1140_s28, 1024  }
 0x9db   : > { %1568 = vsyncadd (!%p1415_p1), %s1140_s28, 4294966272  ;;  %p15_p2 = scmp.ge.s32.totalorder %s1644_s21, 4   ;;  %s1870_s15 = smov %s1575_s16 }
 0x9dc   : > { %s1871_s16 = smov %s1579_s17  ;;  %s1872_s17 = smov %s1655_s24 }
 0x9dd   : > { %s1873_s18 = smov %s1644_s21  ;;  %17 = sbr.rel (!%p15_p2) target bundleno = 3 (0x3), region = 88 }
 0x9e4   :  { %1153 = vsyncpa [#allocation3], 1 }
 0x9e5   :  { %1155 = vsyncpa [#allocation3 + $0x1], 1 }

// kernel: transformer_encoder_layer.5
= control target key start
LH: loop header
LB: loop body
LE: loop exit
PB: predicated region body
PF: predicated region fallthrough
CT: control target
= control target key end

     0   :  { %s1857_s0 = inlined_call_operand.vmem [shape: f32[32,64], index: 0, kind: input, shape index: {}]   ;;  %s1858_s1 = inlined_call_operand.vmem [shape: f32[32,64], index: 1, kind: input, shape index: {}]   ;;  %s1859_s2 = inlined_call_operand.vmem [shape: f32[64,64], index: 2, kind: input, shape index: {}]   ;;  %s1860_s3 = inlined_call_operand.vmem [shape: f32[1,64], index: 3, kind: input, shape index: {}]   ;;  %s1861_s4 = inlined_call_operand.vmem [shape: f32[1,64], index: 4, kind: input, shape index: {}]   ;;  %s1862_s5 = inlined_call_operand.vmem [shape: f32[1,64], index: 5, kind: input, shape index: {}]   ;;  %s1863_s6 = inlined_call_operand.vmem [shape: f32[64,256], index: 6, kind: input, shape index: {}]   ;;  %s1864_s7 = inlined_call_operand.vmem [shape: f32[1,256], index: 7, kind: input, shape index: {}]   ;;  %s1865_s8 = inlined_call_operand.vmem [shape: f32[256,64], index: 8, kind: input, shape index: {}]   ;;  %s1866_s9 = inlined_call_operand.vmem [shape: f32[1,64], index: 9, kind: input, shape index: {}]   ;;  %s1867_s10 = inlined_call_operand.hbm [shape: f32[32,64], index: 10, kind: output, shape index: {}]  }
   0x1   :  { %1882 = sst [smem:[#allocation21_spill]] %s1863_s6 }
   0x2   :  { %1883 = sst [smem:[#allocation22_spill]] %s1867_s10 }
   0x3   :  { %15 = vsyncpa [#allocation7], 0 }
   0x4   :  { %17 = vsyncpa [#allocation7 + $0x1], 0  ;;  %s1564_s13 = smov 0   ;;  %s1566_s14 = smov 0  }
   0x5   :  { %s1568_s15 = smov 0   ;;  %s1570_s16 = smov 0  }
   0x6   :  { %s1572_s17 = smov 0   ;;  %s1574_s18 = smov 0  }
   0x7   :  { %s1576_s19 = smov 0   ;;  %s1578_s20 = smov 0  }
   0x8   :  { %s1580_s21 = smov 0   ;;  %s1582_s22 = smov 0  }
   0x9 LB: > { %1884 = sst [smem:[#allocation9_spill]] %s1466_s13  ;;  %s1082_s23 = sadd.s32 4294967295, %s1502_s22   ;;  %s1502_s22 = sphi %s1582_s22, %s23_s22   ;;  %s1498_s21 = sphi %s1580_s21, %s1914_s21   ;;  %s1494_s20 = sphi %s1578_s20, %s1913_s20   ;;  %s1490_s19 = sphi %s1576_s19, %s1917_s19   ;;  %s1486_s18 = sphi %s1574_s18, %s1911_s18   ;;  %s1482_s17 = sphi %s1572_s17, %s1910_s17   ;;  %s1478_s16 = sphi %s1570_s16, %s1909_s16   ;;  %s1474_s15 = sphi %s1568_s15, %s1908_s15   ;;  %s1470_s14 = sphi %s1566_s14, %s1916_s14   ;;  %s1466_s13 = sphi %s1564_s13, %s1915_s13  }
   0xa   : > { %1885 = sst [smem:[#allocation10_spill]] %s1474_s15  ;;  %s1083_s24 = sadd.s32 4294967294, %s1502_s22  }
   0xb   : > { %1886 = sst [smem:[#allocation11_spill]] %s1482_s17  ;;  %s32_s25 = sadd.s32 1, %s1494_s20 }
   0xc   : > { %1887 = sst [smem:[#allocation12_spill]] %s1494_s20  ;;  %s35_s26 = sadd.s32 1, %s1498_s21 }
   0xd   : > { %1888 = sst [smem:[#allocation13_spill]] %s1498_s21  ;;  %p33_p0 = scmp.ge.s32.totalorder %s32_s25, 2 }
   0xe   : > { %1889 = sst [smem:[#allocation14_spill]] %s1502_s22  ;;  %s178_s27 = sadd.s32 1, %s1482_s17 }
   0xf   : > { %p185_p1 = scmp.ne.s32.totalorder %s1482_s17, %s1478_s16  ;;  %p186_p2 = scmp.eq.s32.totalorder %s1502_s22, 0 }
  0x10   : > { %s1919_s25 = smov (%p33_p0, %s32_s25), 0  ;;  %s1921_s26 = smov (!%p33_p0, %s35_s26), %s1498_s21 }
  0x11   : > { %1890 = sst [smem:[#allocation15_spill]] %s1919_s25  ;;  %s175_s28 = ssub.s32 %s1494_s20, %s1919_s25 }
  0x12   : > { %p1627_p3 = por %p186_p2, %p185_p1  ;;  %p37_p4 = scmp.ge.s32.totalorder %s1921_s26, 2 }
  0x13   : > { %p176_p5 = scmp.eq.s32.totalorder %s175_s28, 0  ;;  %s277_s30 = sadd.s32 1, %s1474_s15 }
  0x14   : > { %p287_p6 = scmp.ne.s32.totalorder %s1474_s15, %s1470_s14  ;;  %s1923_s26 = smov (%p37_p4, %s1921_s26), 0 }
  0x15   : > { %1892 = sst [smem:[#allocation16_spill]] %s1923_s26  ;;  %s274_s12 = ssub.s32 %s1498_s21, %s1923_s26 }
  0x16   : > { %s1637_s11 = scalar_select %p176_p5, %s1482_s17, %s178_s27  }
  0x17   : > { %p288_p7 = scmp.eq.s32.totalorder %s1082_s23, 3  ;;  %p275_p8 = scmp.eq.s32.totalorder %s274_s12, 0 }
  0x18   : > { %1893 = sst [smem:[#allocation17_spill]] %s1637_s11  ;;  %p293_p9 = scmp.ne.s32.totalorder %s1470_s14, %s1466_s13 }
  0x19   : > { %p1643_p10 = por %p288_p7, %p287_p6  ;;  %p294_p11 = scmp.eq.s32.totalorder %s1083_s24, 3 }
  0x1a   : > { %s1648_s25 = scalar_select %p275_p8, %s1474_s15, %s277_s30  }
  0x1b   : > { %s1894_s10 = scalar_select %p1643_p10, 1, 0 }
  0x1c   : > { %1896 = sst [smem:[#allocation19_spill]] %s1648_s25  ;;  %p1650_p12 = por %p294_p11, %p293_p9 }
  0x1d   : > { %1895 = sst [smem:[#allocation18_spill]] %s1894_s10  ;;  %p1085_p13 = scmp.ge.s32.totalorder %s1502_s22, 4 }
  0x1e   : > { %s1897_s28 = scalar_select %p1650_p12, 1, 0 }
  0x1f   : > { %325 = sbr.rel (%p1085_p13) target bundleno = 52 (0x34), region = 36 }
  0x20   : > { %1898 = sst [smem:[#allocation20_spill]] %s1897_s28 }
  0x26   : > { %346 = sbr.rel (!%p1627_p3) target bundleno = 52 (0x34), region = 48  ;;  %s348_s23 = sand.u32 (%p1627_p3), 1, %s1482_s17  }
  0x27   : > { %s1087_s27 = sshll.u32 (%p1627_p3), %s1494_s20, 3  ;;  %s1086_s12 = sshll.u32 (%p1627_p3), %s348_s23, 6 }
  0x28   : > { %s1899_s6 = sld [smem:[#allocation21_spill]] (%p1627_p3)  ;;  %s350_s30 = scalar_lea.vmem (%p1627_p3), [#allocation5], %s1086_s12 }
  0x2e   : > { %s352_s24 = scalar_lea.vmem %s1899_s6, %s1087_s27 }
  0x2f   : > { %v394_v0 = vld [vmem:[%s352_s24] sm:$0xff]  ;;  %v396_v1 = vld [vmem:[%s352_s24 + $0x10] sm:$0xff] }
  0x30   : > { %v398_v2 = vld [vmem:[%s352_s24 + $0x20] sm:$0xff]  ;;  %395 = vst [vmem:[%s350_s30] sm:$0xff] %v394_v0  ;;  %397 = vst [vmem:[%s350_s30 + $0x8] sm:$0xff] %v396_v1  ;;  %v400_v3 = vld [vmem:[%s352_s24 + $0x30] sm:$0xff] }
  0x31   : > { %399 = vst [vmem:[%s350_s30 + $0x10] sm:$0xff] %v398_v2  ;;  %v402_v4 = vld [vmem:[%s352_s24 + $0x40] sm:$0xff]  ;;  %v404_v5 = vld [vmem:[%s352_s24 + $0x50] sm:$0xff]  ;;  %401 = vst [vmem:[%s350_s30 + $0x18] sm:$0xff] %v400_v3 }
  0x32   : > { %403 = vst [vmem:[%s350_s30 + $0x20] sm:$0xff] %v402_v4  ;;  %405 = vst [vmem:[%s350_s30 + $0x28] sm:$0xff] %v404_v5  ;;  %v406_v6 = vld [vmem:[%s352_s24 + $0x60] sm:$0xff]  ;;  %v408_v7 = vld [vmem:[%s352_s24 + $0x70] sm:$0xff] }
  0x33   : > { %407 = vst [vmem:[%s350_s30 + $0x30] sm:$0xff] %v406_v6  ;;  %409 = vst [vmem:[%s350_s30 + $0x38] sm:$0xff] %v408_v7 }
  0x34 PF: > { %p1088_p0 = scmp.ge.s32.totalorder %s1502_s22, 1  ;;  %p429_p1 = scmp.lt.s32.totalorder %s1502_s22, 5 }
  0x36   : > { %p430_p2 = pnand %p1088_p0, %p429_p1 }
  0x37   : > { %s436_s21 = sand.u32 (!%p430_p2), 1, %s1478_s16   ;;  %s1874_s26 = sand.u32 (!%p430_p2), 1, %s1470_s14  }
  0x38   : > { %433 = sbr.rel (%p430_p2) target bundleno = 1157 (0x485), region = 94  ;;  %s1089_s29 = sshll.u32 (!%p430_p2), %s436_s21, 6 }
  0x39   : > { %s1090_s23 = sshll.u32 (!%p430_p2), %s1874_s26, 4  ;;  %s1091_s27 = sshll.u32 (!%p430_p2), %s1490_s19, 1 }
  0x3a   : > { %p503_p3 = scmp.lt.s32.totalorder (!%p430_p2), %s1486_s18, 1  ;;  %p492_p4 = scmp.lt.s32.totalorder (!%p430_p2), %s1091_s27, 3 }
  0x3b   : > { %s1095_s12 = sshll.u32 (!%p430_p2), %s1486_s18, 4  ;;  %s1693_s6 = scalar_lea.vmem (!%p430_p2), [#allocation5], %s1089_s29 }
  0x3c   : > { %p507_p5 = scmp.lt.s32.totalorder (!%p430_p2), %s1095_s12, 31  ;;  %p1097_p6 = scmp.ne.s32.totalorder (!%p430_p2), %s1486_s18, 0 }
  0x3f   : > { %s1672_s24 = scalar_select %p503_p3, %s1486_s18, 1 }
  0x40   : > { %s1925_s27 = smov (!%p492_p4, %s1091_s27), 3  ;;  %s1927_s12 = smov (!%p507_p5, %s1095_s12), 31 }
  0x41   : > { %s505_s20 = scalar_lea.vmem %s1864_s7, %s1672_s24  ;;  %s1092_s11 = sshll.u32 %s1925_s27, 3  ;;  %v521_v8 = vld [vmem:[%s1859_s2] sm:$0xff] (!%p1097_p6)  ;;  %v522_v9 = vld [vmem:[%s1859_s2 + $0x8] sm:$0xff] (!%p1097_p6)  ;;  %v523_v10 = vld [vmem:[%s1859_s2 + $0x10] sm:$0xff] (!%p1097_p6)  ;;  %vm529_vm0 = vcmask (!%p1097_p6), 523264   ;;  %v1504_v13 = vmov (!%p1097_p6), 0.0  }
  0x42   : > { %s1681_s21 = scalar_lea.vmem %s1857_s0, %s1092_s11  ;;  %s1686_s15 = scalar_lea.vmem %s1858_s1, %s1092_s11  ;;  %v1225_v11 = vpack.c.bf16 (!%p1097_p6), %v522_v9, %v521_v8  ;;  %v524_v12 = vld [vmem:[%s1859_s2 + $0x18] sm:$0xff] (!%p1097_p6)  ;;  %671 = vst.msk [vmem:[#allocation4] sm:$0xff] (!%p1097_p6), %vm529_vm0, %v1504_v13  ;;  %672 = vst.msk [vmem:[#allocation4 + $0x8] sm:$0xff] (!%p1097_p6), %vm529_vm0, %v1504_v13  ;;  %v525_v15 = vld [vmem:[%s1859_s2 + $0x20] sm:$0xff] (!%p1097_p6) }
  0x43   : > { %s1096_s28 = sshll.u32 %s1927_s12, 3  ;;  %s1695_s27 = scalar_lea.vmem [#allocation6], %s1090_s23  ;;  %v1229_v14 = vpack.c.bf16 (!%p1097_p6), %v524_v12, %v523_v10  ;;  %v526_v16 = vld [vmem:[%s1859_s2 + $0x28] sm:$0xff] (!%p1097_p6)  ;;  %v519_v17 = vld [vmem:[%s1686_s15] sm:$0xff] (!%p1097_p6)  ;;  %v527_v19 = vld [vmem:[%s1859_s2 + $0x30] sm:$0xff] (!%p1097_p6) }
  0x44   : > { %s1691_s10 = scalar_lea.vmem %s1865_s8, %s1096_s28  ;;  %516 = sbr.rel (%p1097_p6) target bundleno = 619 (0x26b), region = 102  ;;  %1226 = vmatprep.subr.bf16.mxu0 (!%p1097_p6), %v1225_v11  ;;  %1168 = vmatprep.mubr.msk.f32.mxu0 (!%p1097_p6), %vm529_vm0, %v519_v17  ;;  %v1233_v18 = vpack.c.bf16 (!%p1097_p6), %v526_v16, %v525_v15  ;;  %v528_v20 = vld [vmem:[%s1859_s2 + $0x38] sm:$0xff] (!%p1097_p6)  ;;  %v520_v22 = vld [vmem:[%s1686_s15 + $0x8] sm:$0xff] (!%p1097_p6)  ;;  %v517_v24 = vld [vmem:[%s1681_s21] sm:$0xff] (!%p1097_p6) }
  0x45   : > { %1228 = vmatpush3.bf16.msra.mxu0 (!%p1097_p6), %v1225_v11  ;;  %v1237_v21 = vpack.c.bf16 (!%p1097_p6), %v528_v20, %v527_v19  ;;  %v518_v23 = vld [vmem:[%s1681_s21 + $0x8] sm:$0xff] (!%p1097_p6)  ;;  %v1100_v26 = vld [vmem:[%s1860_s3] ss:$0 sm:$0xff] (!%p1097_p6) }
  0x46   : > { %1230 = vmatprep.subr.bf16.mxu0 (!%p1097_p6), %v1229_v14  ;;  %v1101_v51 = vld [vmem:[%s1861_s4] ss:$0 sm:$0xff] (!%p1097_p6) }
  0x47   : > { %v1102_v53 = vld [vmem:[%s1862_s5] ss:$0 sm:$0xff] (!%p1097_p6) }
  0x49   : > { %1232 = vmatpush3.bf16.msra.mxu0 (!%p1097_p6), %v1229_v14 }
  0x4a   : > { %1234 = vmatprep.subr.bf16.mxu0 (!%p1097_p6), %v1233_v18 }
  0x4d   : > { %1236 = vmatpush3.bf16.msra.mxu0 %v1233_v18 }
  0x4e   : > { %1238 = vmatprep.subr.bf16.mxu0 %v1237_v21 }
  0x51   : > { %1240 = vmatpush3.bf16.msra.mxu0 %v1237_v21 }
  0x54   : > { %1169 = vmatmul.mubr.msk.f32.vlgmr.msra.gmra.mrb[0].mxu0 %vm529_vm0, %v520_v22 }
 0x127   : > { %v1170_v25 = vpop.f32.mrb[0].mxu0 }
 0x128   : > { %v612_v27 = vadd.f32 %v1170_v25, %v518_v23  ;;  %v602_v28 = vpop.f32.mrb[1].mxu0 }
 0x129   : > { %v611_v29 = vadd.f32 %v602_v28, %v517_v24 }
 0x12a   : > { %v621_v30 = vadd.f32 %v1100_v26, %v612_v27 }
 0x12b   : > { %v620_v31 = vadd.f32 %v1100_v26, %v611_v29 }
 0x12c   : > { %623 = vst.msk [vmem:[#allocation2 + $0x8] sm:$0xff] %vm529_vm0, %v621_v30  ;;  %v629_v33 = vsel %vm529_vm0, %v621_v30, 0.0 }
 0x12d   : > { %622 = vst.msk [vmem:[#allocation2] sm:$0xff] %vm529_vm0, %v620_v31  ;;  %v626_v32 = vsel %vm529_vm0, %v620_v31, 0.0 }
 0x12e   : > { %627 = vadd.xlane.f32.xlu0 %v626_v32 }
 0x132   : > { %630 = vadd.xlane.f32.xlu0 %v629_v33 }
 0x1bb   : > { %v628_v34 = vpop.xlane.xlu0 %627 }
 0x1bc   : > { %v633_v35 = vmul.f32 0.015625, %v628_v34 }
 0x1be   : > { %v635_v36 = vsub.f32 %v620_v31, %v633_v35 }
 0x1bf   : > { %v631_v37 = vpop.xlane.xlu0 %630 }
 0x1c0   : > { %v634_v38 = vmul.f32 0.015625, %v631_v37  ;;  %v637_v39 = vmul.f32 %v635_v36, %v635_v36 }
 0x1c2   : > { %v636_v40 = vsub.f32 %v621_v30, %v634_v38  ;;  %v639_v41 = vsel %vm529_vm0, %v637_v39, 0.0 }
 0x1c3   : > { %640 = vadd.xlane.f32.xlu1 %v639_v41 }
 0x1c4   : > { %v638_v42 = vmul.f32 %v636_v40, %v636_v40 }
 0x1c6   : > { %v642_v43 = vsel %vm529_vm0, %v638_v42, 0.0 }
 0x1c7   : > { %643 = vadd.xlane.f32.xlu1 %v642_v43 }
 0x250   : > { %v641_v44 = vpop.xlane.xlu1 %640 }
 0x251   : > { %v645_v45 = vmul.f32 0.015625, %v641_v44 }
 0x253   : > { %v647_v46 = vadd.f32 1e-05, %v645_v45 }
 0x254   : > { %v644_v47 = vpop.xlane.xlu1 %643 }
 0x255   : > { %1380 = vrsqrt.f32 %v647_v46  ;;  %v646_v48 = vmul.f32 0.015625, %v644_v47 }
 0x257   : > { %v648_v49 = vadd.f32 1e-05, %v646_v48 }
 0x259   : > { %1382 = vrsqrt.f32 %v648_v49 }
 0x25f   : > { %v1381_v50 = vpop.eup %1380 }
 0x260   : > { %v651_v52 = vmul.f32 %v1381_v50, %v635_v36 }
 0x262   : > { %v659_v54 = vmul.f32 %v1101_v51, %v651_v52 }
 0x263   : > { %v1383_v55 = vpop.eup %1382 }
 0x264   : > { %v667_v56 = vadd.f32 %v1102_v53, %v659_v54  ;;  %v652_v57 = vmul.f32 %v1383_v55, %v636_v40 }
 0x266   : > { %669 = vst.msk [vmem:[#allocation3] sm:$0xff] %vm529_vm0, %v667_v56  ;;  %v660_v58 = vmul.f32 %v1101_v51, %v652_v57 }
 0x268   : > { %v668_v59 = vadd.f32 %v1102_v53, %v660_v58 }
 0x26a   : > { %670 = vst.msk [vmem:[#allocation3 + $0x8] sm:$0xff] %vm529_vm0, %v668_v59 }
 0x26b PF: > { %v675_v60 = vld [vmem:[%s1693_s6] sm:$0xff]  ;;  %v676_v61 = vld [vmem:[%s1693_s6 + $0x8] sm:$0xff]  ;;  %v677_v62 = vld [vmem:[%s1693_s6 + $0x10] sm:$0xff]  ;;  %vm690_vm1 = vcmask 523264   ;;  %p1106_p7 = scmp.ne.s32.totalorder %s1486_s18, 1 }
 0x26c   : > { %v1241_v63 = vpack.c.bf16 %v676_v61, %v675_v60  ;;  %v678_v0 = vld [vmem:[%s1693_s6 + $0x18] sm:$0xff]  ;;  %v679_v2 = vld [vmem:[%s1693_s6 + $0x20] sm:$0xff]  ;;  %v680_v3 = vld [vmem:[%s1693_s6 + $0x28] sm:$0xff] }
 0x26d   : > { %v1245_v1 = vpack.c.bf16 %v678_v0, %v677_v62  ;;  %v673_v4 = vld [vmem:[#allocation3] sm:$0xff]  ;;  %v1249_v5 = vpack.c.bf16 %v680_v3, %v679_v2  ;;  %v681_v6 = vld [vmem:[%s1693_s6 + $0x30] sm:$0xff]  ;;  %v682_v7 = vld [vmem:[%s1693_s6 + $0x38] sm:$0xff] }
 0x26e   : > { %1242 = vmatprep.subr.bf16.mxu0 %v1241_v63  ;;  %1187 = vmatprep.mubr.msk.f32.mxu0 %vm690_vm1, %v673_v4  ;;  %v1253_v8 = vpack.c.bf16 %v682_v7, %v681_v6  ;;  %v828_v10 = vld [vmem:[%s1691_s10] sm:$0xff]  ;;  %v829_v11 = vld [vmem:[%s1691_s10 + $0x8] sm:$0xff]  ;;  %v830_v12 = vld [vmem:[%s1691_s10 + $0x10] sm:$0xff] }
 0x26f   : > { %1244 = vmatpush3.bf16.msra.mxu0 %v1241_v63  ;;  %v1257_v13 = vpack.c.bf16 %v829_v11, %v828_v10  ;;  %v831_v14 = vld [vmem:[%s1691_s10 + $0x18] sm:$0xff]  ;;  %v832_v16 = vld [vmem:[%s1691_s10 + $0x20] sm:$0xff]  ;;  %v833_v17 = vld [vmem:[%s1691_s10 + $0x28] sm:$0xff] }
 0x270   : > { %1246 = vmatprep.subr.bf16.mxu0 %v1245_v1  ;;  %v1261_v15 = vpack.c.bf16 %v831_v14, %v830_v12  ;;  %v1265_v18 = vpack.c.bf16 %v833_v17, %v832_v16  ;;  %v834_v19 = vld [vmem:[%s1691_s10 + $0x30] sm:$0xff]  ;;  %v835_v20 = vld [vmem:[%s1691_s10 + $0x38] sm:$0xff]  ;;  %v836_v22 = vld [vmem:[%s1691_s10 + $0x40] sm:$0xff]  ;;  %v1505_v14 = vmov -1.0  }
 0x271   : > { %v674_v9 = vld [vmem:[#allocation3 + $0x8] sm:$0xff]  ;;  %1258 = vmatprep.subr.bf16.mxu1 %v1257_v13  ;;  %v1269_v21 = vpack.c.bf16 %v835_v20, %v834_v19  ;;  %v837_v23 = vld [vmem:[%s1691_s10 + $0x48] sm:$0xff]  ;;  %v838_v25 = vld [vmem:[%s1691_s10 + $0x50] sm:$0xff] }
 0x272   : > { %1260 = vmatpush3.bf16.msra.mxu1 %v1257_v13  ;;  %v1273_v24 = vpack.c.bf16 %v837_v23, %v836_v22  ;;  %v839_v26 = vld [vmem:[%s1691_s10 + $0x58] sm:$0xff]  ;;  %v840_v28 = vld [vmem:[%s1691_s10 + $0x60] sm:$0xff]  ;;  %v841_v29 = vld [vmem:[%s1691_s10 + $0x68] sm:$0xff] }
 0x273   : > { %1248 = vmatpush3.bf16.msra.mxu0 %v1245_v1  ;;  %1262 = vmatprep.subr.bf16.mxu1 %v1261_v15  ;;  %v1277_v27 = vpack.c.bf16 %v839_v26, %v838_v25  ;;  %v1281_v30 = vpack.c.bf16 %v841_v29, %v840_v28  ;;  %v842_v31 = vld [vmem:[%s1691_s10 + $0x70] sm:$0xff]  ;;  %v843_v32 = vld [vmem:[%s1691_s10 + $0x78] sm:$0xff]  ;;  %v1103_v34 = vld [vmem:[%s505_s20] ss:$0 sm:$0xff] }
 0x274   : > { %1250 = vmatprep.subr.bf16.mxu0 %v1249_v5  ;;  %v1285_v33 = vpack.c.bf16 %v843_v32, %v842_v31  ;;  %v827_v26 = vld [vmem:[#allocation4 + $0x8] sm:$0xff]  ;;  %v927_v32 = vld [vmem:[#allocation2] sm:$0xff] (!%p1106_p7) }
 0x276   : > { %1264 = vmatpush3.bf16.msra.mxu1 %v1261_v15 }
 0x277   : > { %1252 = vmatpush3.bf16.msra.mxu0 %v1249_v5  ;;  %1266 = vmatprep.subr.bf16.mxu1 %v1265_v18 }
 0x278   : > { %1254 = vmatprep.subr.bf16.mxu0 %v1253_v8 }
 0x27a   : > { %1268 = vmatpush3.bf16.msra.mxu1 %v1265_v18 }
 0x27b   : > { %1256 = vmatpush3.bf16.msra.mxu0 %v1253_v8  ;;  %1270 = vmatprep.subr.bf16.mxu1 %v1269_v21 }
 0x27e   : > { %1188 = vmatmul.mubr.msk.f32.vlgmr.msra.gmra.mrb[0].mxu0 %vm690_vm1, %v674_v9  ;;  %1272 = vmatpush3.bf16.msra.mxu1 %v1269_v21 }
 0x27f   : > { %1274 = vmatprep.subr.bf16.mxu1 %v1273_v24 }
 0x282   : > { %1276 = vmatpush3.bf16.msra.mxu1 %v1273_v24 }
 0x283   : > { %1278 = vmatprep.subr.bf16.mxu1 %v1277_v27 }
 0x286   : > { %1280 = vmatpush3.bf16.msra.mxu1 %v1277_v27  ;;  %v826_v27 = vld [vmem:[#allocation4] sm:$0xff] }
 0x287   : > { %1282 = vmatprep.subr.bf16.mxu1 %v1281_v30 }
 0x28a   : > { %1284 = vmatpush3.bf16.msra.mxu1 %v1281_v30 }
 0x28b   : > { %1286 = vmatprep.subr.bf16.mxu1 %v1285_v33 }
 0x28e   : > { %1288 = vmatpush3.bf16.msra.mxu1 %v1285_v33 }
 0x351   : > { %v1189_v35 = vpop.f32.mrb[0].mxu0 }
 0x352   : > { %v769_v36 = vadd.f32 %v1189_v35, %v1103_v34  ;;  %v763_v37 = vpop.f32.mrb[1].mxu0 }
 0x353   : > { %v764_v38 = vadd.f32 %v1103_v34, %v763_v37  ;;  %v1107_v34 = vld [vmem:[%s1866_s9] ss:$0 sm:$0xff] (!%p1106_p7) }
 0x354   : > { %v773_v39 = vmul.f32 0.70710677, %v769_v36  ;;  %v821_v23 = vmul.f32 0.5, %v769_v36  ;;  %v928_v36 = vld [vmem:[#allocation2 + $0x8] sm:$0xff] (!%p1106_p7) }
 0x355   : > { %v772_v40 = vmul.f32 0.70710677, %v764_v38  ;;  %v820_v21 = vmul.f32 0.5, %v764_v38 }
 0x356   : > { %v779_v41 = vand.u32 2147483647, %v773_v39  ;;  %vm775_vm2 = vcmp.ge.f32.partialorder %v773_v39, 0.0 }
 0x357   : > { %v778_v42 = vand.u32 2147483647, %v772_v40  ;;  %vm774_vm3 = vcmp.ge.f32.partialorder %v772_v40, 0.0  ;;  %v777_v15 = vsel %vm775_vm2, 1.0, %v1505_v14 }
 0x358   : > { %v781_v43 = vmul.f32 0.3275911, %v779_v41  ;;  %v807_v47 = vsub.f32 0.0, %v779_v41  ;;  %v776_v17 = vsel %vm774_vm3, 1.0, %v1505_v14 }
 0x359   : > { %v780_v44 = vmul.f32 0.3275911, %v778_v42  ;;  %v806_v48 = vsub.f32 0.0, %v778_v42 }
 0x35a   : > { %v783_v45 = vadd.f32 1.0, %v781_v43  ;;  %v809_v50 = vmul.f32 %v807_v47, %v779_v41 }
 0x35b   : > { %v782_v46 = vadd.f32 1.0, %v780_v44  ;;  %v808_v52 = vmul.f32 %v806_v48, %v778_v42 }
 0x35c   : > { %1384 = vrcp.f32 %v783_v45  ;;  %v812_v56 = vmul.f32 1.442695, %v809_v50 }
 0x35d   : > { %1386 = vrcp.f32 %v782_v46  ;;  %v810_v58 = vmul.f32 1.442695, %v808_v52 }
 0x35e   : > { %1388 = vpow2.f32 %v812_v56 }
 0x35f   : > { %1390 = vpow2.f32 %v810_v58 }
 0x366   : > { %v1385_v49 = vpop.eup %1384 }
 0x367   : > { %v1387_v51 = vpop.eup %1386  ;;  %v789_v53 = vmul.f32 1.0614054, %v1385_v49 }
 0x368   : > { %v788_v54 = vmul.f32 1.0614054, %v1387_v51  ;;  %v1389_v8 = vpop.eup %1388 }
 0x369   : > { %v791_v55 = vadd.f32 -1.4531521, %v789_v53  ;;  %v1391_v10 = vpop.eup %1390 }
 0x36a   : > { %v790_v57 = vadd.f32 -1.4531521, %v788_v54 }
 0x36b   : > { %v793_v59 = vmul.f32 %v1385_v49, %v791_v55 }
 0x36c   : > { %v792_v60 = vmul.f32 %v1387_v51, %v790_v57 }
 0x36d   : > { %v795_v61 = vadd.f32 1.4214138, %v793_v59 }
 0x36e   : > { %v794_v62 = vadd.f32 1.4214138, %v792_v60 }
 0x36f   : > { %v797_v63 = vmul.f32 %v1385_v49, %v795_v61 }
 0x370   : > { %v796_v0 = vmul.f32 %v1387_v51, %v794_v62 }
 0x371   : > { %v799_v1 = vadd.f32 -0.28449672, %v797_v63 }
 0x372   : > { %v798_v2 = vadd.f32 -0.28449672, %v796_v0 }
 0x373   : > { %v801_v3 = vmul.f32 %v1385_v49, %v799_v1 }
 0x374   : > { %v800_v4 = vmul.f32 %v1387_v51, %v798_v2 }
 0x375   : > { %v803_v5 = vadd.f32 0.2548296, %v801_v3 }
 0x376   : > { %v802_v6 = vadd.f32 0.2548296, %v800_v4 }
 0x377   : > { %v805_v7 = vmul.f32 %v1385_v49, %v803_v5 }
 0x378   : > { %v804_v9 = vmul.f32 %v1387_v51, %v802_v6 }
 0x379   : > { %v815_v11 = vmul.f32 %v1389_v8, %v805_v7 }
 0x37a   : > { %v814_v12 = vmul.f32 %v1391_v10, %v804_v9 }
 0x37b   : > { %v817_v13 = vsub.f32 1.0, %v815_v11 }
 0x37c   : > { %v816_v16 = vsub.f32 1.0, %v814_v12 }
 0x37d   : > { %v819_v18 = vmul.f32 %v817_v13, %v777_v15 }
 0x37e   : > { %v818_v19 = vmul.f32 %v816_v16, %v776_v17 }
 0x37f   : > { %v823_v20 = vadd.f32 1.0, %v819_v18 }
 0x380   : > { %v822_v22 = vadd.f32 1.0, %v818_v19 }
 0x381   : > { %v825_v25 = vmul.f32 %v823_v20, %v821_v23 }
 0x382   : > { %v824_v24 = vmul.f32 %v822_v22, %v820_v21 }
 0x384   : > { %1222 = vmatprep.mubr.f32.mxu1 %v824_v24 }
 0x385   : > { %1223 = vmatmul.mubr.f32.vlgmr.msra.gmra.mrb[0].mxu1 %v825_v25 }
 0x456   : > { %926 = sbr.rel (%p1106_p7) target bundleno = 1129 (0x469), region = 106 }
 0x458   : > { %v1224_v28 = vpop.f32.mrb[0].mxu1 }
 0x459   : > { %v920_v29 = vadd.f32 %v1224_v28, %v827_v26  ;;  %v910_v30 = vpop.f32.mrb[1].mxu1 }
 0x45a   : > { %v919_v31 = vadd.f32 %v910_v30, %v826_v27 }
 0x45b   : > { %922 = vst.msk [vmem:[#allocation4 + $0x8] sm:$0xff] %vm690_vm1, %v920_v29 }
 0x45c   : > { %921 = vst.msk [vmem:[#allocation4] sm:$0xff] %vm690_vm1, %v919_v31 }
 0x462   : > { %v930_v37 = vld [vmem:[#allocation4 + $0x8] sm:$0xff] }
 0x463   : > { %v929_v33 = vld [vmem:[#allocation4] sm:$0xff]  ;;  %v932_v38 = vadd.f32 %v930_v37, %v928_v36 }
 0x464   : > { %v931_v35 = vadd.f32 %v929_v33, %v927_v32 }
 0x465   : > { %v941_v40 = vadd.f32 %v1107_v34, %v932_v38 }
 0x466   : > { %v940_v39 = vadd.f32 %v1107_v34, %v931_v35 }
 0x467   : > { %943 = vst.msk [vmem:[%s1695_s27 + $0x8] sm:$0xff] %vm690_vm1, %v941_v40 }
 0x468   : > { %942 = vst.msk [vmem:[%s1695_s27] sm:$0xff] %vm690_vm1, %v940_v39 }
 0x469 PF: > { %s1113_s24 = sshll.u32 %s1490_s19, 8  ;;  %s1901_s16 = sld [smem:[#allocation22_spill]] }
 0x46a   : > { %s958_s25 = sshll.u32 %s1695_s27, 4  ;;  %s1903_s11 = sand.u32 1, %s1470_s14   ;;  %s1795_s25 = int_to_ptr.vmem [resolvable:$true] %s958_s25 }
 0x46b   : > { %s1799_s26 = scalar_lea.sflag [#allocation7], %s1903_s11  ;;  %s1392_s13 = scalar_lea.vmem %s1795_s25, 256 }
 0x46c   : > { %p1393_p8 = scmp.ne.s32.totalorder %s1795_s25, %s1392_s13  ;;  %s1506_s19 = smov [#allocation6]  }
 0x46d   : > { %s1396_s15 = sshll.u32 %s1506_s19, 4  ;;  %s1397_s15 = int_to_ptr.vmem [resolvable:$false] %s1396_s15 }
 0x46e   : > { %p1394_p9 = pnand %p1393_p8, %p1643_p10  ;;  %s1398_s21 = scalar_lea.vmem %s1397_s15, 512 }
 0x46f   : > { %s1902_s30 = smov %s1901_s16  ;;  %s1792_s17 = scalar_lea.hbm %s1901_s16, %s1113_s24 }
 0x470   : > { %p1395_p11 = pneg %p1394_p9  ;;  %p1399_p13 = scmp.lt.s32.totalorder %s1795_s25, %s1397_s15 }
 0x471   : > { %p1400_p0 = scmp.lt.s32.totalorder %s1398_s21, %s1392_s13 }
 0x473   : > { %p1401_p1 = por %p1400_p0, %p1399_p13 }
 0x475   : > { %p1402_p2 = pnand %p1401_p1, %p1395_p11 }
 0x477   : > { %1405 = shalt.err (!%p1402_p2)
}
 0x478   : > { %s1406_s27 = scalar_lea.hbm %s1792_s17, 256  ;;  %s1410_s6 = scalar_lea.hbm %s1902_s30, 512 }
 0x479   : > { %p1407_p3 = scmp.ne.s32.totalorder %s1792_s17, %s1406_s27  ;;  %p1411_p6 = scmp.lt.u32.totalorder %s1792_s17, %s1902_s30 }
 0x47a   : > { %p1412_p7 = scmp.lt.u32.totalorder %s1410_s6, %s1406_s27  ;;  %p1414_p9 = scmp.lt.u32.totalorder %s1406_s27, %s1792_s17 }
 0x47b   : > { %p1408_p4 = pnand %p1407_p3, %p1643_p10 }
 0x47c   : > { %p1413_p8 = por %p1412_p7, %p1411_p6 }
 0x47d   : > { %p1409_p5 = pneg %p1408_p4 }
 0x47e   : > { %p1415_p11 = por %p1414_p9, %p1413_p8 }
 0x480   : > { %p1416_p13 = pnand %p1415_p11, %p1409_p5 }
 0x482   : > { %1419 = shalt.err (!%p1416_p13)
}
 0x483   : > { %s1507_s20 = smov 128   ;;  %s1508_s24 = smov 8  }
 0x484   : > { %1289 = dma.vmem_to_hbm [thread:$0]  (%p1643_p10), %s1795_s25, 256, %s1792_s17, %s1799_s26, %s1507_s20, %s1507_s20, %s1508_s24  }
 0x485 PF: > { %s1904_s23 = sld [smem:[#allocation14_spill]]  ;;  %s1905_s12 = sld [smem:[#allocation9_spill]] }
 0x48b   : > { %p1295_p0 = scmp.ge.s32.totalorder %s1904_s23, 2  ;;  %s973_s11 = sand.u32 1, %s1905_s12  }
 0x48c   : > { %s974_s13 = scalar_lea.sflag [#allocation7], %s973_s11 }
 0x48d   : > { %p1292_p1 = pnand %p1295_p0, %p1650_p12 }
 0x48f   : > { %1461 = dma.done.wait (!%p1292_p1), %s974_s13, 256  }
 0x490   : > { %1463 = vsyncadd (!%p1292_p1), %s974_s13, 4294967040  ;;  %s23_s22 = sadd.s32 1, %s1904_s23   ;;  %s1907_s19 = sld [smem:[#allocation10_spill]] }
 0x491   : > { %p20_p2 = scmp.ge.s32.totalorder %s23_s22, 6   ;;  %s1908_s15 = sld [smem:[#allocation19_spill]] }
 0x492   : > { %s1909_s16 = sld [smem:[#allocation11_spill]]  ;;  %s1910_s17 = sld [smem:[#allocation17_spill]] }
 0x493   : > { %s1911_s18 = sld [smem:[#allocation12_spill]]  ;;  %s1912_s25 = sld [smem:[#allocation13_spill]] }
 0x494   : > { %s1913_s20 = sld [smem:[#allocation15_spill]]  ;;  %s1914_s21 = sld [smem:[#allocation16_spill]] }
 0x495   : > { %s1915_s13 = smov %s1470_s14  ;;  %22 = sbr.rel (!%p20_p2) target bundleno = 9 (0x9), region = 158 }
 0x496   : > { %s1916_s14 = smov %s1907_s19 }
 0x499   : > { %s1917_s19 = smov %s1912_s25 }
 0x49c   :  { %979 = vsyncpa [#allocation7], 1 }
 0x49d   :  { %981 = vsyncpa [#allocation7 + $0x1], 1 }

</bundles_post_ra>
